<compile_context>
chip_gen: v5e
topology: v5e:2x2
jax: 0.10.0
libtpu: 0.0.40
codegen_flags: <defaults>
</compile_context>

<pallas_src>
import math

import jax
import jax.numpy as jnp
from jax.experimental import pallas as pl
from jax.experimental.pallas import tpu as pltpu

# Small shapes consistent with the module (scaled down from
# vocab/300/1024/1024 -> 64/32/32/128).
VOCAB = 64          # qst_vocab_size
WORD_EMBED = 32     # word_embed_size
HIDDEN = 32         # hidden_size   (4*HIDDEN = 128 -> lane-dense gate matmuls)
EMBED = 128         # embed_size    (lane-dense output stores)
NUM_LAYERS = 2      # fixed 2-layer LSTM, as in the module
BATCH = 2
SEQ = 8


# ------------------------------ Pallas forward -------------------------------

def textchannel_forward(params, question):
    """question: (B, T) int32 token ids -> (B, T, EMBED) f32."""
    B, T = question.shape
    V, E = params["emb"].shape
    H = params["w_hh1"].shape[0]
    EMB = params["w_fc"].shape[1]

    # Time-major flat ids: ids_tm[t*B + b] = question[b, t] (so per-timestep
    # rows are contiguous inside the kernel -> static slices only).
    ids_tm = jnp.transpose(question.astype(jnp.int32)).reshape(T * B)
    # Layer-2 fused weight: [w_ih2; w_hh2]  (2H, 4H).
    w2_stacked = jnp.concatenate([params["w_ih2"], params["w_hh2"]], axis=0)

    def kernel(ids_ref, emb_ref,
               wih1_ref, whh1_ref, b1_ref,
               w2_ref, b2_ref,
               wfc_ref, bfc_ref,
               o_ref, x_buf):
        # ---- embedding gather: SMEM ids -> dynamic row reads of the table ---
        for j in range(T * B):
            x_buf[pl.ds(j, 1), :] = emb_ref[pl.ds(ids_ref[j], 1), :]

        x = jnp.tanh(x_buf[...])                                  # (T*B, E)

        # Layer-1 input projection for ALL timesteps at once (off the
        # recurrent critical path): (T*B, E) @ (E, 4H) -> (T*B, 4H).
        gates_x1 = jnp.dot(x, wih1_ref[...],
                           preferred_element_type=jnp.float32) + b1_ref[...]

        w_hh1 = whh1_ref[...]
        w_2 = w2_ref[...]
        w_fc = wfc_ref[...]
        # Hoisted broadcasts (JAX does not CSE broadcast_in_dim in loops).
        b2 = jnp.broadcast_to(b2_ref[...], (B, 4 * H))
        b_fc = jnp.broadcast_to(bfc_ref[...], (B, EMB))

        def gate_nonlin(g):
            # Two full-128-lane EUP ops per step instead of four partial ones:
            # sigmoid(x) = 0.5 * (tanh(x/2) + 1).  PyTorch gate order i,f,g,o.
            sg = 0.5 * (jnp.tanh(0.5 * g) + 1.0)
            th = jnp.tanh(g)
            return (sg[:, 0:H], sg[:, H:2 * H],
                    th[:, 2 * H:3 * H], sg[:, 3 * H:4 * H])

        z = jnp.zeros((B, H), jnp.float32)
        h1, c1, h2, c2 = z, z, z, z

        # Interleaved (software-pipelined) recurrence: iteration t computes
        # layer-2 step t-1 (consuming h1[t-1]) and layer-1 step t.  The two
        # blocks are data-independent within an iteration.
        for t in range(T + 1):
            if t > 0:
                # Layer 2, time step t-1 (h1 currently holds h1[t-1]).
                zcat = jnp.concatenate([h1, h2], axis=1)          # (B, 2H)
                g2 = jnp.dot(zcat, w_2,
                             preferred_element_type=jnp.float32) + b2
                i2, f2, gg2, o2 = gate_nonlin(g2)
                c2 = f2 * c2 + i2 * gg2
                h2 = o2 * jnp.tanh(c2)
                # Fused fc for this timestep; lane-dense (B, 128) store.
                out_t = jnp.dot(h2, w_fc,
                                preferred_element_type=jnp.float32) + b_fc
                o_ref[pl.ds((t - 1) * B, B), :] = out_t.astype(o_ref.dtype)
            if t < T:
                # Layer 1, time step t (reads h1[t-1], then updates h1).
                g1 = gates_x1[t * B:(t + 1) * B, :] + jnp.dot(
                    h1, w_hh1, preferred_element_type=jnp.float32)
                i1, f1, gg1, o1 = gate_nonlin(g1)
                c1 = f1 * c1 + i1 * gg1
                h1 = o1 * jnp.tanh(c1)

    vmem = pl.BlockSpec(memory_space=pltpu.MemorySpace.VMEM)
    out_flat = pl.pallas_call(
        kernel,
        out_shape=jax.ShapeDtypeStruct((T * B, EMB), jnp.float32),
        in_specs=[
            pl.BlockSpec(memory_space=pltpu.MemorySpace.SMEM),    # token ids
            vmem,                                                 # emb table
            vmem, vmem, vmem,                                     # layer 1
            vmem, vmem,                                           # layer 2
            vmem, vmem,                                           # fc
        ],
        out_specs=vmem,
        scratch_shapes=[pltpu.VMEM((T * B, E), jnp.float32)],     # embeddings
    )(ids_tm, params["emb"],
      params["w_ih1"], params["w_hh1"], params["b1"],
      w2_stacked, params["b2"],
      params["w_fc"], params["b_fc"])

    # Time-major (T*B, EMB) -> (B, T, EMB); tiny XLA reshuffle outside kernel.
    return jnp.transpose(out_flat.reshape(T, B, EMB), (1, 0, 2))


# ------------------------------ parameter init -------------------------------

def init_params(key):
    ks = jax.random.split(key, 9)
    kH = 1.0 / math.sqrt(HIDDEN)
    kF = 1.0 / math.sqrt(HIDDEN)
    u = lambda k, shape, bound: jax.random.uniform(
        k, shape, jnp.float32, -bound, bound)
    return {
        # nn.Embedding default init ~ N(0, 1)
        "emb": jax.random.normal(ks[0], (VOCAB, WORD_EMBED), jnp.float32),
        # LSTM layer 1 (weights stored transposed: (in, 4H)); bias = b_ih + b_hh
        "w_ih1": u(ks[1], (WORD_EMBED, 4 * HIDDEN), kH),
        "w_hh1": u(ks[2], (HIDDEN, 4 * HIDDEN), kH),
        "b1":    u(ks[3], (1, 4 * HIDDEN), kH),
        # LSTM layer 2
        "w_ih2": u(ks[4], (HIDDEN, 4 * HIDDEN), kH),
        "w_hh2": u(ks[5], (HIDDEN, 4 * HIDDEN), kH),
        "b2":    u(ks[6], (1, 4 * HIDDEN), kH),
        # fc
        "w_fc":  u(ks[7], (HIDDEN, EMBED), kF),
        "b_fc":  u(ks[8], (1, EMBED), kF),
    }


# ----------------------------- pure-JAX reference ----------------------------

def textchannel_reference(params, question):
    x = jnp.tanh(params["emb"][question])                         # (B, T, E)

    def lstm_layer(x_in, wih, whh, b):
        B = x_in.shape[0]
        H = whh.shape[0]

        def step(carry, xt):
            h, c = carry
            g = xt @ wih + h @ whh + b                            # (B, 4H)
            i = jax.nn.sigmoid(g[:, 0:H])
            f = jax.nn.sigmoid(g[:, H:2 * H])
            gg = jnp.tanh(g[:, 2 * H:3 * H])
            o = jax.nn.sigmoid(g[:, 3 * H:4 * H])
            c = f * c + i * gg
            h = o * jnp.tanh(c)
            return (h, c), h

        init = (jnp.zeros((B, H), jnp.float32), jnp.zeros((B, H), jnp.float32))
        _, ys = jax.lax.scan(step, init, jnp.swapaxes(x_in, 0, 1))
        return jnp.swapaxes(ys, 0, 1)                             # (B, T, H)

    y = lstm_layer(x, params["w_ih1"], params["w_hh1"], params["b1"])
    y = lstm_layer(y, params["w_ih2"], params["w_hh2"], params["b2"])
    return y @ params["w_fc"] + params["b_fc"]


# ----------------------------------- main -------------------------------------

if __name__ == "__main__":
    key = jax.random.PRNGKey(0)
    pkey, qkey = jax.random.split(key)

    params = init_params(pkey)
    question = jax.random.randint(qkey, (BATCH, SEQ), 0, VOCAB, jnp.int32)

    fwd = jax.jit(textchannel_forward)
    out = fwd(params, question)
    jax.block_until_ready(out)

    ref = textchannel_reference(params, question)
    assert out.shape == (BATCH, SEQ, EMBED)
    assert jnp.allclose(out, ref, atol=2e-3, rtol=2e-3), (
        float(jnp.max(jnp.abs(out - ref))))

    print("KERNEL_OK")
</pallas_src>

<mosaic_0001>
module attributes {stable_mosaic.version = 11 : i64} {
  func.func @kernel(%arg0: memref<16xi32, #tpu.memory_space<smem>>, %arg1: memref<64x32xf32, #tpu.memory_space<vmem>>, %arg2: memref<32x128xf32, #tpu.memory_space<vmem>>, %arg3: memref<32x128xf32, #tpu.memory_space<vmem>>, %arg4: memref<1x128xf32, #tpu.memory_space<vmem>>, %arg5: memref<64x128xf32, #tpu.memory_space<vmem>>, %arg6: memref<1x128xf32, #tpu.memory_space<vmem>>, %arg7: memref<32x128xf32, #tpu.memory_space<vmem>>, %arg8: memref<1x128xf32, #tpu.memory_space<vmem>>, %arg9: memref<16x128xf32, #tpu.memory_space<vmem>>, %arg10: memref<16x32xf32, #tpu.memory_space<vmem>>) attributes {dimension_semantics = [], scalar_prefetch = 0 : i64, scratch_operands = 1 : i64, tpu.core_type = #tpu.core_type<tc>} {
    %c0 = arith.constant 0 : index
    %0 = memref.load %arg0[%c0] : memref<16xi32, #tpu.memory_space<smem>>
    %1 = arith.index_cast %0 : i32 to index
    %c0_0 = arith.constant 0 : index
    %2 = vector.load %arg1[%1, %c0_0] : memref<64x32xf32, #tpu.memory_space<vmem>>, vector<1x32xf32>
    %c0_1 = arith.constant 0 : index
    %c0_2 = arith.constant 0 : index
    %3 = vector.load %arg10[%c0_1, %c0_2] : memref<16x32xf32, #tpu.memory_space<vmem>>, vector<1x32xf32>
    tpu.vector_store %arg10[%c0_1, %c0_2], %2 {strides = array<i32>} : memref<16x32xf32, #tpu.memory_space<vmem>>, vector<1x32xf32>,
    %c1 = arith.constant 1 : index
    %4 = memref.load %arg0[%c1] : memref<16xi32, #tpu.memory_space<smem>>
    %5 = arith.index_cast %4 : i32 to index
    %c0_3 = arith.constant 0 : index
    %6 = vector.load %arg1[%5, %c0_3] : memref<64x32xf32, #tpu.memory_space<vmem>>, vector<1x32xf32>
    %c1_4 = arith.constant 1 : index
    %c0_5 = arith.constant 0 : index
    %7 = vector.load %arg10[%c1_4, %c0_5] : memref<16x32xf32, #tpu.memory_space<vmem>>, vector<1x32xf32>
    tpu.vector_store %arg10[%c1_4, %c0_5], %6 {strides = array<i32>} : memref<16x32xf32, #tpu.memory_space<vmem>>, vector<1x32xf32>,
    %c2 = arith.constant 2 : index
    %8 = memref.load %arg0[%c2] : memref<16xi32, #tpu.memory_space<smem>>
    %9 = arith.index_cast %8 : i32 to index
    %c0_6 = arith.constant 0 : index
    %10 = vector.load %arg1[%9, %c0_6] : memref<64x32xf32, #tpu.memory_space<vmem>>, vector<1x32xf32>
    %c2_7 = arith.constant 2 : index
    %c0_8 = arith.constant 0 : index
    %11 = vector.load %arg10[%c2_7, %c0_8] : memref<16x32xf32, #tpu.memory_space<vmem>>, vector<1x32xf32>
    tpu.vector_store %arg10[%c2_7, %c0_8], %10 {strides = array<i32>} : memref<16x32xf32, #tpu.memory_space<vmem>>, vector<1x32xf32>,
    %c3 = arith.constant 3 : index
    %12 = memref.load %arg0[%c3] : memref<16xi32, #tpu.memory_space<smem>>
    %13 = arith.index_cast %12 : i32 to index
    %c0_9 = arith.constant 0 : index
    %14 = vector.load %arg1[%13, %c0_9] : memref<64x32xf32, #tpu.memory_space<vmem>>, vector<1x32xf32>
    %c3_10 = arith.constant 3 : index
    %c0_11 = arith.constant 0 : index
    %15 = vector.load %arg10[%c3_10, %c0_11] : memref<16x32xf32, #tpu.memory_space<vmem>>, vector<1x32xf32>
    tpu.vector_store %arg10[%c3_10, %c0_11], %14 {strides = array<i32>} : memref<16x32xf32, #tpu.memory_space<vmem>>, vector<1x32xf32>,
    %c4 = arith.constant 4 : index
    %16 = memref.load %arg0[%c4] : memref<16xi32, #tpu.memory_space<smem>>
    %17 = arith.index_cast %16 : i32 to index
    %c0_12 = arith.constant 0 : index
    %18 = vector.load %arg1[%17, %c0_12] : memref<64x32xf32, #tpu.memory_space<vmem>>, vector<1x32xf32>
    %c4_13 = arith.constant 4 : index
    %c0_14 = arith.constant 0 : index
    %19 = vector.load %arg10[%c4_13, %c0_14] : memref<16x32xf32, #tpu.memory_space<vmem>>, vector<1x32xf32>
    tpu.vector_store %arg10[%c4_13, %c0_14], %18 {strides = array<i32>} : memref<16x32xf32, #tpu.memory_space<vmem>>, vector<1x32xf32>,
    %c5 = arith.constant 5 : index
    %20 = memref.load %arg0[%c5] : memref<16xi32, #tpu.memory_space<smem>>
    %21 = arith.index_cast %20 : i32 to index
    %c0_15 = arith.constant 0 : index
    %22 = vector.load %arg1[%21, %c0_15] : memref<64x32xf32, #tpu.memory_space<vmem>>, vector<1x32xf32>
    %c5_16 = arith.constant 5 : index
    %c0_17 = arith.constant 0 : index
    %23 = vector.load %arg10[%c5_16, %c0_17] : memref<16x32xf32, #tpu.memory_space<vmem>>, vector<1x32xf32>
    tpu.vector_store %arg10[%c5_16, %c0_17], %22 {strides = array<i32>} : memref<16x32xf32, #tpu.memory_space<vmem>>, vector<1x32xf32>,
    %c6 = arith.constant 6 : index
    %24 = memref.load %arg0[%c6] : memref<16xi32, #tpu.memory_space<smem>>
    %25 = arith.index_cast %24 : i32 to index
    %c0_18 = arith.constant 0 : index
    %26 = vector.load %arg1[%25, %c0_18] : memref<64x32xf32, #tpu.memory_space<vmem>>, vector<1x32xf32>
    %c6_19 = arith.constant 6 : index
    %c0_20 = arith.constant 0 : index
    %27 = vector.load %arg10[%c6_19, %c0_20] : memref<16x32xf32, #tpu.memory_space<vmem>>, vector<1x32xf32>
    tpu.vector_store %arg10[%c6_19, %c0_20], %26 {strides = array<i32>} : memref<16x32xf32, #tpu.memory_space<vmem>>, vector<1x32xf32>,
    %c7 = arith.constant 7 : index
    %28 = memref.load %arg0[%c7] : memref<16xi32, #tpu.memory_space<smem>>
    %29 = arith.index_cast %28 : i32 to index
    %c0_21 = arith.constant 0 : index
    %30 = vector.load %arg1[%29, %c0_21] : memref<64x32xf32, #tpu.memory_space<vmem>>, vector<1x32xf32>
    %c7_22 = arith.constant 7 : index
    %c0_23 = arith.constant 0 : index
    %31 = vector.load %arg10[%c7_22, %c0_23] : memref<16x32xf32, #tpu.memory_space<vmem>>, vector<1x32xf32>
    tpu.vector_store %arg10[%c7_22, %c0_23], %30 {strides = array<i32>} : memref<16x32xf32, #tpu.memory_space<vmem>>, vector<1x32xf32>,
    %c8 = arith.constant 8 : index
    %32 = memref.load %arg0[%c8] : memref<16xi32, #tpu.memory_space<smem>>
    %33 = arith.index_cast %32 : i32 to index
    %c0_24 = arith.constant 0 : index
    %34 = vector.load %arg1[%33, %c0_24] : memref<64x32xf32, #tpu.memory_space<vmem>>, vector<1x32xf32>
    %c8_25 = arith.constant 8 : index
    %c0_26 = arith.constant 0 : index
    %35 = vector.load %arg10[%c8_25, %c0_26] : memref<16x32xf32, #tpu.memory_space<vmem>>, vector<1x32xf32>
    tpu.vector_store %arg10[%c8_25, %c0_26], %34 {strides = array<i32>} : memref<16x32xf32, #tpu.memory_space<vmem>>, vector<1x32xf32>,
    %c9 = arith.constant 9 : index
    %36 = memref.load %arg0[%c9] : memref<16xi32, #tpu.memory_space<smem>>
    %37 = arith.index_cast %36 : i32 to index
    %c0_27 = arith.constant 0 : index
    %38 = vector.load %arg1[%37, %c0_27] : memref<64x32xf32, #tpu.memory_space<vmem>>, vector<1x32xf32>
    %c9_28 = arith.constant 9 : index
    %c0_29 = arith.constant 0 : index
    %39 = vector.load %arg10[%c9_28, %c0_29] : memref<16x32xf32, #tpu.memory_space<vmem>>, vector<1x32xf32>
    tpu.vector_store %arg10[%c9_28, %c0_29], %38 {strides = array<i32>} : memref<16x32xf32, #tpu.memory_space<vmem>>, vector<1x32xf32>,
    %c10 = arith.constant 10 : index
    %40 = memref.load %arg0[%c10] : memref<16xi32, #tpu.memory_space<smem>>
    %41 = arith.index_cast %40 : i32 to index
    %c0_30 = arith.constant 0 : index
    %42 = vector.load %arg1[%41, %c0_30] : memref<64x32xf32, #tpu.memory_space<vmem>>, vector<1x32xf32>
    %c10_31 = arith.constant 10 : index
    %c0_32 = arith.constant 0 : index
    %43 = vector.load %arg10[%c10_31, %c0_32] : memref<16x32xf32, #tpu.memory_space<vmem>>, vector<1x32xf32>
    tpu.vector_store %arg10[%c10_31, %c0_32], %42 {strides = array<i32>} : memref<16x32xf32, #tpu.memory_space<vmem>>, vector<1x32xf32>,
    %c11 = arith.constant 11 : index
    %44 = memref.load %arg0[%c11] : memref<16xi32, #tpu.memory_space<smem>>
    %45 = arith.index_cast %44 : i32 to index
    %c0_33 = arith.constant 0 : index
    %46 = vector.load %arg1[%45, %c0_33] : memref<64x32xf32, #tpu.memory_space<vmem>>, vector<1x32xf32>
    %c11_34 = arith.constant 11 : index
    %c0_35 = arith.constant 0 : index
    %47 = vector.load %arg10[%c11_34, %c0_35] : memref<16x32xf32, #tpu.memory_space<vmem>>, vector<1x32xf32>
    tpu.vector_store %arg10[%c11_34, %c0_35], %46 {strides = array<i32>} : memref<16x32xf32, #tpu.memory_space<vmem>>, vector<1x32xf32>,
    %c12 = arith.constant 12 : index
    %48 = memref.load %arg0[%c12] : memref<16xi32, #tpu.memory_space<smem>>
    %49 = arith.index_cast %48 : i32 to index
    %c0_36 = arith.constant 0 : index
    %50 = vector.load %arg1[%49, %c0_36] : memref<64x32xf32, #tpu.memory_space<vmem>>, vector<1x32xf32>
    %c12_37 = arith.constant 12 : index
    %c0_38 = arith.constant 0 : index
    %51 = vector.load %arg10[%c12_37, %c0_38] : memref<16x32xf32, #tpu.memory_space<vmem>>, vector<1x32xf32>
    tpu.vector_store %arg10[%c12_37, %c0_38], %50 {strides = array<i32>} : memref<16x32xf32, #tpu.memory_space<vmem>>, vector<1x32xf32>,
    %c13 = arith.constant 13 : index
    %52 = memref.load %arg0[%c13] : memref<16xi32, #tpu.memory_space<smem>>
    %53 = arith.index_cast %52 : i32 to index
    %c0_39 = arith.constant 0 : index
    %54 = vector.load %arg1[%53, %c0_39] : memref<64x32xf32, #tpu.memory_space<vmem>>, vector<1x32xf32>
    %c13_40 = arith.constant 13 : index
    %c0_41 = arith.constant 0 : index
    %55 = vector.load %arg10[%c13_40, %c0_41] : memref<16x32xf32, #tpu.memory_space<vmem>>, vector<1x32xf32>
    tpu.vector_store %arg10[%c13_40, %c0_41], %54 {strides = array<i32>} : memref<16x32xf32, #tpu.memory_space<vmem>>, vector<1x32xf32>,
    %c14 = arith.constant 14 : index
    %56 = memref.load %arg0[%c14] : memref<16xi32, #tpu.memory_space<smem>>
    %57 = arith.index_cast %56 : i32 to index
    %c0_42 = arith.constant 0 : index
    %58 = vector.load %arg1[%57, %c0_42] : memref<64x32xf32, #tpu.memory_space<vmem>>, vector<1x32xf32>
    %c14_43 = arith.constant 14 : index
    %c0_44 = arith.constant 0 : index
    %59 = vector.load %arg10[%c14_43, %c0_44] : memref<16x32xf32, #tpu.memory_space<vmem>>, vector<1x32xf32>
    tpu.vector_store %arg10[%c14_43, %c0_44], %58 {strides = array<i32>} : memref<16x32xf32, #tpu.memory_space<vmem>>, vector<1x32xf32>,
    %c15 = arith.constant 15 : index
    %60 = memref.load %arg0[%c15] : memref<16xi32, #tpu.memory_space<smem>>
    %61 = arith.index_cast %60 : i32 to index
    %c0_45 = arith.constant 0 : index
    %62 = vector.load %arg1[%61, %c0_45] : memref<64x32xf32, #tpu.memory_space<vmem>>, vector<1x32xf32>
    %c15_46 = arith.constant 15 : index
    %c0_47 = arith.constant 0 : index
    %63 = vector.load %arg10[%c15_46, %c0_47] : memref<16x32xf32, #tpu.memory_space<vmem>>, vector<1x32xf32>
    tpu.vector_store %arg10[%c15_46, %c0_47], %62 {strides = array<i32>} : memref<16x32xf32, #tpu.memory_space<vmem>>, vector<1x32xf32>,
    %c0_48 = arith.constant 0 : index
    %c0_49 = arith.constant 0 : index
    %64 = vector.load %arg10[%c0_48, %c0_49] : memref<16x32xf32, #tpu.memory_space<vmem>>, vector<16x32xf32>
    %65 = math.tanh %64 : vector<16x32xf32>
    %c0_50 = arith.constant 0 : index
    %c0_51 = arith.constant 0 : index
    %66 = vector.load %arg2[%c0_50, %c0_51] : memref<32x128xf32, #tpu.memory_space<vmem>>, vector<32x128xf32>
    %cst = arith.constant dense<0.000000e+00> : vector<16x128xf32>
    %67 = tpu.matmul %65, %66, %cst {dimension_numbers = #tpu.dot_dimension_numbers<[1], [0], [0], [1], [0, 0, 1, 1], [], []>} : vector<16x32xf32>, vector<32x128xf32>, vector<16x128xf32> -> vector<16x128xf32>
    %c0_52 = arith.constant 0 : index
    %c0_53 = arith.constant 0 : index
    %68 = vector.load %arg4[%c0_52, %c0_53] : memref<1x128xf32, #tpu.memory_space<vmem>>, vector<1x128xf32>
    %69 = vector.broadcast %68 : vector<1x128xf32> to vector<16x128xf32>
    %70 = arith.addf %67, %69 : vector<16x128xf32>
    %c0_54 = arith.constant 0 : index
    %c0_55 = arith.constant 0 : index
    %71 = vector.load %arg3[%c0_54, %c0_55] : memref<32x128xf32, #tpu.memory_space<vmem>>, vector<32x128xf32>
    %c0_56 = arith.constant 0 : index
    %c0_57 = arith.constant 0 : index
    %72 = vector.load %arg5[%c0_56, %c0_57] : memref<64x128xf32, #tpu.memory_space<vmem>>, vector<64x128xf32>
    %c0_58 = arith.constant 0 : index
    %c0_59 = arith.constant 0 : index
    %73 = vector.load %arg7[%c0_58, %c0_59] : memref<32x128xf32, #tpu.memory_space<vmem>>, vector<32x128xf32>
    %c0_60 = arith.constant 0 : index
    %c0_61 = arith.constant 0 : index
    %74 = vector.load %arg6[%c0_60, %c0_61] : memref<1x128xf32, #tpu.memory_space<vmem>>, vector<1x128xf32>
    %75 = vector.shape_cast %74 : vector<1x128xf32> to vector<1x128xf32>
    %76 = vector.broadcast %75 : vector<1x128xf32> to vector<2x128xf32>
    %c0_62 = arith.constant 0 : index
    %c0_63 = arith.constant 0 : index
    %77 = vector.load %arg8[%c0_62, %c0_63] : memref<1x128xf32, #tpu.memory_space<vmem>>, vector<1x128xf32>
    %78 = vector.shape_cast %77 : vector<1x128xf32> to vector<1x128xf32>
    %79 = vector.broadcast %78 : vector<1x128xf32> to vector<2x128xf32>
    %cst_64 = arith.constant 0.000000e+00 : f32
    %80 = vector.broadcast %cst_64 : f32 to vector<2x32xf32>
    %81 = vector.extract_strided_slice %70 {offsets = [0, 0], sizes = [2, 128], strides = [1, 1]} : vector<16x128xf32> to vector<2x128xf32>
    %cst_65 = arith.constant dense<0.000000e+00> : vector<2x128xf32>
    %82 = tpu.matmul %80, %71, %cst_65 {dimension_numbers = #tpu.dot_dimension_numbers<[1], [0], [0], [1], [0, 0, 1, 1], [], []>} : vector<2x32xf32>, vector<32x128xf32>, vector<2x128xf32> -> vector<2x128xf32>
    %83 = arith.addf %81, %82 : vector<2x128xf32>
    %cst_66 = arith.constant 5.000000e-01 : f32
    %84 = vector.broadcast %cst_66 : f32 to vector<2x128xf32>
    %85 = arith.mulf %84, %83 : vector<2x128xf32>
    %86 = math.tanh %85 : vector<2x128xf32>
    %cst_67 = arith.constant 1.000000e+00 : f32
    %87 = vector.broadcast %cst_67 : f32 to vector<2x128xf32>
    %88 = arith.addf %86, %87 : vector<2x128xf32>
    %cst_68 = arith.constant 5.000000e-01 : f32
    %89 = vector.broadcast %cst_68 : f32 to vector<2x128xf32>
    %90 = arith.mulf %89, %88 : vector<2x128xf32>
    %91 = math.tanh %83 : vector<2x128xf32>
    %92 = vector.extract_strided_slice %90 {offsets = [0, 0], sizes = [2, 32], strides = [1, 1]} : vector<2x128xf32> to vector<2x32xf32>
    %93 = vector.extract_strided_slice %90 {offsets = [0, 32], sizes = [2, 32], strides = [1, 1]} : vector<2x128xf32> to vector<2x32xf32>
    %94 = vector.extract_strided_slice %91 {offsets = [0, 64], sizes = [2, 32], strides = [1, 1]} : vector<2x128xf32> to vector<2x32xf32>
    %95 = vector.extract_strided_slice %90 {offsets = [0, 96], sizes = [2, 32], strides = [1, 1]} : vector<2x128xf32> to vector<2x32xf32>
    %96 = arith.mulf %93, %80 : vector<2x32xf32>
    %97 = arith.mulf %92, %94 : vector<2x32xf32>
    %98 = arith.addf %96, %97 : vector<2x32xf32>
    %99 = math.tanh %98 : vector<2x32xf32>
    %100 = arith.mulf %95, %99 : vector<2x32xf32>
    %101 = tpu.concatenate %100, %80 in 1 : vector<2x32xf32>, vector<2x32xf32> -> vector<2x64xf32>
    %cst_69 = arith.constant dense<0.000000e+00> : vector<2x128xf32>
    %102 = tpu.matmul %101, %72, %cst_69 {dimension_numbers = #tpu.dot_dimension_numbers<[1], [0], [0], [1], [0, 0, 1, 1], [], []>} : vector<2x64xf32>, vector<64x128xf32>, vector<2x128xf32> -> vector<2x128xf32>
    %103 = arith.addf %102, %76 : vector<2x128xf32>
    %cst_70 = arith.constant 5.000000e-01 : f32
    %104 = vector.broadcast %cst_70 : f32 to vector<2x128xf32>
    %105 = arith.mulf %104, %103 : vector<2x128xf32>
    %106 = math.tanh %105 : vector<2x128xf32>
    %cst_71 = arith.constant 1.000000e+00 : f32
    %107 = vector.broadcast %cst_71 : f32 to vector<2x128xf32>
    %108 = arith.addf %106, %107 : vector<2x128xf32>
    %cst_72 = arith.constant 5.000000e-01 : f32
    %109 = vector.broadcast %cst_72 : f32 to vector<2x128xf32>
    %110 = arith.mulf %109, %108 : vector<2x128xf32>
    %111 = math.tanh %103 : vector<2x128xf32>
    %112 = vector.extract_strided_slice %110 {offsets = [0, 0], sizes = [2, 32], strides = [1, 1]} : vector<2x128xf32> to vector<2x32xf32>
    %113 = vector.extract_strided_slice %110 {offsets = [0, 32], sizes = [2, 32], strides = [1, 1]} : vector<2x128xf32> to vector<2x32xf32>
    %114 = vector.extract_strided_slice %111 {offsets = [0, 64], sizes = [2, 32], strides = [1, 1]} : vector<2x128xf32> to vector<2x32xf32>
    %115 = vector.extract_strided_slice %110 {offsets = [0, 96], sizes = [2, 32], strides = [1, 1]} : vector<2x128xf32> to vector<2x32xf32>
    %116 = arith.mulf %113, %80 : vector<2x32xf32>
    %117 = arith.mulf %112, %114 : vector<2x32xf32>
    %118 = arith.addf %116, %117 : vector<2x32xf32>
    %119 = math.tanh %118 : vector<2x32xf32>
    %120 = arith.mulf %115, %119 : vector<2x32xf32>
    %cst_73 = arith.constant dense<0.000000e+00> : vector<2x128xf32>
    %121 = tpu.matmul %120, %73, %cst_73 {dimension_numbers = #tpu.dot_dimension_numbers<[1], [0], [0], [1], [0, 0, 1, 1], [], []>} : vector<2x32xf32>, vector<32x128xf32>, vector<2x128xf32> -> vector<2x128xf32>
    %122 = arith.addf %121, %79 : vector<2x128xf32>
    %c0_74 = arith.constant 0 : index
    %c0_75 = arith.constant 0 : index
    %123 = vector.load %arg9[%c0_74, %c0_75] : memref<16x128xf32, #tpu.memory_space<vmem>>, vector<2x128xf32>
    tpu.vector_store %arg9[%c0_74, %c0_75], %122 {strides = array<i32>} : memref<16x128xf32, #tpu.memory_space<vmem>>, vector<2x128xf32>,
    %124 = vector.extract_strided_slice %70 {offsets = [2, 0], sizes = [2, 128], strides = [1, 1]} : vector<16x128xf32> to vector<2x128xf32>
    %cst_76 = arith.constant dense<0.000000e+00> : vector<2x128xf32>
    %125 = tpu.matmul %100, %71, %cst_76 {dimension_numbers = #tpu.dot_dimension_numbers<[1], [0], [0], [1], [0, 0, 1, 1], [], []>} : vector<2x32xf32>, vector<32x128xf32>, vector<2x128xf32> -> vector<2x128xf32>
    %126 = arith.addf %124, %125 : vector<2x128xf32>
    %cst_77 = arith.constant 5.000000e-01 : f32
    %127 = vector.broadcast %cst_77 : f32 to vector<2x128xf32>
    %128 = arith.mulf %127, %126 : vector<2x128xf32>
    %129 = math.tanh %128 : vector<2x128xf32>
    %cst_78 = arith.constant 1.000000e+00 : f32
    %130 = vector.broadcast %cst_78 : f32 to vector<2x128xf32>
    %131 = arith.addf %129, %130 : vector<2x128xf32>
    %cst_79 = arith.constant 5.000000e-01 : f32
    %132 = vector.broadcast %cst_79 : f32 to vector<2x128xf32>
    %133 = arith.mulf %132, %131 : vector<2x128xf32>
    %134 = math.tanh %126 : vector<2x128xf32>
    %135 = vector.extract_strided_slice %133 {offsets = [0, 0], sizes = [2, 32], strides = [1, 1]} : vector<2x128xf32> to vector<2x32xf32>
    %136 = vector.extract_strided_slice %133 {offsets = [0, 32], sizes = [2, 32], strides = [1, 1]} : vector<2x128xf32> to vector<2x32xf32>
    %137 = vector.extract_strided_slice %134 {offsets = [0, 64], sizes = [2, 32], strides = [1, 1]} : vector<2x128xf32> to vector<2x32xf32>
    %138 = vector.extract_strided_slice %133 {offsets = [0, 96], sizes = [2, 32], strides = [1, 1]} : vector<2x128xf32> to vector<2x32xf32>
    %139 = arith.mulf %136, %98 : vector<2x32xf32>
    %140 = arith.mulf %135, %137 : vector<2x32xf32>
    %141 = arith.addf %139, %140 : vector<2x32xf32>
    %142 = math.tanh %141 : vector<2x32xf32>
    %143 = arith.mulf %138, %142 : vector<2x32xf32>
    %144 = tpu.concatenate %143, %120 in 1 : vector<2x32xf32>, vector<2x32xf32> -> vector<2x64xf32>
    %cst_80 = arith.constant dense<0.000000e+00> : vector<2x128xf32>
    %145 = tpu.matmul %144, %72, %cst_80 {dimension_numbers = #tpu.dot_dimension_numbers<[1], [0], [0], [1], [0, 0, 1, 1], [], []>} : vector<2x64xf32>, vector<64x128xf32>, vector<2x128xf32> -> vector<2x128xf32>
    %146 = arith.addf %145, %76 : vector<2x128xf32>
    %cst_81 = arith.constant 5.000000e-01 : f32
    %147 = vector.broadcast %cst_81 : f32 to vector<2x128xf32>
    %148 = arith.mulf %147, %146 : vector<2x128xf32>
    %149 = math.tanh %148 : vector<2x128xf32>
    %cst_82 = arith.constant 1.000000e+00 : f32
    %150 = vector.broadcast %cst_82 : f32 to vector<2x128xf32>
    %151 = arith.addf %149, %150 : vector<2x128xf32>
    %cst_83 = arith.constant 5.000000e-01 : f32
    %152 = vector.broadcast %cst_83 : f32 to vector<2x128xf32>
    %153 = arith.mulf %152, %151 : vector<2x128xf32>
    %154 = math.tanh %146 : vector<2x128xf32>
    %155 = vector.extract_strided_slice %153 {offsets = [0, 0], sizes = [2, 32], strides = [1, 1]} : vector<2x128xf32> to vector<2x32xf32>
    %156 = vector.extract_strided_slice %153 {offsets = [0, 32], sizes = [2, 32], strides = [1, 1]} : vector<2x128xf32> to vector<2x32xf32>
    %157 = vector.extract_strided_slice %154 {offsets = [0, 64], sizes = [2, 32], strides = [1, 1]} : vector<2x128xf32> to vector<2x32xf32>
    %158 = vector.extract_strided_slice %153 {offsets = [0, 96], sizes = [2, 32], strides = [1, 1]} : vector<2x128xf32> to vector<2x32xf32>
    %159 = arith.mulf %156, %118 : vector<2x32xf32>
    %160 = arith.mulf %155, %157 : vector<2x32xf32>
    %161 = arith.addf %159, %160 : vector<2x32xf32>
    %162 = math.tanh %161 : vector<2x32xf32>
    %163 = arith.mulf %158, %162 : vector<2x32xf32>
    %cst_84 = arith.constant dense<0.000000e+00> : vector<2x128xf32>
    %164 = tpu.matmul %163, %73, %cst_84 {dimension_numbers = #tpu.dot_dimension_numbers<[1], [0], [0], [1], [0, 0, 1, 1], [], []>} : vector<2x32xf32>, vector<32x128xf32>, vector<2x128xf32> -> vector<2x128xf32>
    %165 = arith.addf %164, %79 : vector<2x128xf32>
    %c2_85 = arith.constant 2 : index
    %c0_86 = arith.constant 0 : index
    %166 = vector.load %arg9[%c2_85, %c0_86] : memref<16x128xf32, #tpu.memory_space<vmem>>, vector<2x128xf32>
    tpu.vector_store %arg9[%c2_85, %c0_86], %165 {strides = array<i32>} : memref<16x128xf32, #tpu.memory_space<vmem>>, vector<2x128xf32>,
    %167 = vector.extract_strided_slice %70 {offsets = [4, 0], sizes = [2, 128], strides = [1, 1]} : vector<16x128xf32> to vector<2x128xf32>
    %cst_87 = arith.constant dense<0.000000e+00> : vector<2x128xf32>
    %168 = tpu.matmul %143, %71, %cst_87 {dimension_numbers = #tpu.dot_dimension_numbers<[1], [0], [0], [1], [0, 0, 1, 1], [], []>} : vector<2x32xf32>, vector<32x128xf32>, vector<2x128xf32> -> vector<2x128xf32>
    %169 = arith.addf %167, %168 : vector<2x128xf32>
    %cst_88 = arith.constant 5.000000e-01 : f32
    %170 = vector.broadcast %cst_88 : f32 to vector<2x128xf32>
    %171 = arith.mulf %170, %169 : vector<2x128xf32>
    %172 = math.tanh %171 : vector<2x128xf32>
    %cst_89 = arith.constant 1.000000e+00 : f32
    %173 = vector.broadcast %cst_89 : f32 to vector<2x128xf32>
    %174 = arith.addf %172, %173 : vector<2x128xf32>
    %cst_90 = arith.constant 5.000000e-01 : f32
    %175 = vector.broadcast %cst_90 : f32 to vector<2x128xf32>
    %176 = arith.mulf %175, %174 : vector<2x128xf32>
    %177 = math.tanh %169 : vector<2x128xf32>
    %178 = vector.extract_strided_slice %176 {offsets = [0, 0], sizes = [2, 32], strides = [1, 1]} : vector<2x128xf32> to vector<2x32xf32>
    %179 = vector.extract_strided_slice %176 {offsets = [0, 32], sizes = [2, 32], strides = [1, 1]} : vector<2x128xf32> to vector<2x32xf32>
    %180 = vector.extract_strided_slice %177 {offsets = [0, 64], sizes = [2, 32], strides = [1, 1]} : vector<2x128xf32> to vector<2x32xf32>
    %181 = vector.extract_strided_slice %176 {offsets = [0, 96], sizes = [2, 32], strides = [1, 1]} : vector<2x128xf32> to vector<2x32xf32>
    %182 = arith.mulf %179, %141 : vector<2x32xf32>
    %183 = arith.mulf %178, %180 : vector<2x32xf32>
    %184 = arith.addf %182, %183 : vector<2x32xf32>
    %185 = math.tanh %184 : vector<2x32xf32>
    %186 = arith.mulf %181, %185 : vector<2x32xf32>
    %187 = tpu.concatenate %186, %163 in 1 : vector<2x32xf32>, vector<2x32xf32> -> vector<2x64xf32>
    %cst_91 = arith.constant dense<0.000000e+00> : vector<2x128xf32>
    %188 = tpu.matmul %187, %72, %cst_91 {dimension_numbers = #tpu.dot_dimension_numbers<[1], [0], [0], [1], [0, 0, 1, 1], [], []>} : vector<2x64xf32>, vector<64x128xf32>, vector<2x128xf32> -> vector<2x128xf32>
    %189 = arith.addf %188, %76 : vector<2x128xf32>
    %cst_92 = arith.constant 5.000000e-01 : f32
    %190 = vector.broadcast %cst_92 : f32 to vector<2x128xf32>
    %191 = arith.mulf %190, %189 : vector<2x128xf32>
    %192 = math.tanh %191 : vector<2x128xf32>
    %cst_93 = arith.constant 1.000000e+00 : f32
    %193 = vector.broadcast %cst_93 : f32 to vector<2x128xf32>
    %194 = arith.addf %192, %193 : vector<2x128xf32>
    %cst_94 = arith.constant 5.000000e-01 : f32
    %195 = vector.broadcast %cst_94 : f32 to vector<2x128xf32>
    %196 = arith.mulf %195, %194 : vector<2x128xf32>
    %197 = math.tanh %189 : vector<2x128xf32>
    %198 = vector.extract_strided_slice %196 {offsets = [0, 0], sizes = [2, 32], strides = [1, 1]} : vector<2x128xf32> to vector<2x32xf32>
    %199 = vector.extract_strided_slice %196 {offsets = [0, 32], sizes = [2, 32], strides = [1, 1]} : vector<2x128xf32> to vector<2x32xf32>
    %200 = vector.extract_strided_slice %197 {offsets = [0, 64], sizes = [2, 32], strides = [1, 1]} : vector<2x128xf32> to vector<2x32xf32>
    %201 = vector.extract_strided_slice %196 {offsets = [0, 96], sizes = [2, 32], strides = [1, 1]} : vector<2x128xf32> to vector<2x32xf32>
    %202 = arith.mulf %199, %161 : vector<2x32xf32>
    %203 = arith.mulf %198, %200 : vector<2x32xf32>
    %204 = arith.addf %202, %203 : vector<2x32xf32>
    %205 = math.tanh %204 : vector<2x32xf32>
    %206 = arith.mulf %201, %205 : vector<2x32xf32>
    %cst_95 = arith.constant dense<0.000000e+00> : vector<2x128xf32>
    %207 = tpu.matmul %206, %73, %cst_95 {dimension_numbers = #tpu.dot_dimension_numbers<[1], [0], [0], [1], [0, 0, 1, 1], [], []>} : vector<2x32xf32>, vector<32x128xf32>, vector<2x128xf32> -> vector<2x128xf32>
    %208 = arith.addf %207, %79 : vector<2x128xf32>
    %c4_96 = arith.constant 4 : index
    %c0_97 = arith.constant 0 : index
    %209 = vector.load %arg9[%c4_96, %c0_97] : memref<16x128xf32, #tpu.memory_space<vmem>>, vector<2x128xf32>
    tpu.vector_store %arg9[%c4_96, %c0_97], %208 {strides = array<i32>} : memref<16x128xf32, #tpu.memory_space<vmem>>, vector<2x128xf32>,
    %210 = vector.extract_strided_slice %70 {offsets = [6, 0], sizes = [2, 128], strides = [1, 1]} : vector<16x128xf32> to vector<2x128xf32>
    %cst_98 = arith.constant dense<0.000000e+00> : vector<2x128xf32>
    %211 = tpu.matmul %186, %71, %cst_98 {dimension_numbers = #tpu.dot_dimension_numbers<[1], [0], [0], [1], [0, 0, 1, 1], [], []>} : vector<2x32xf32>, vector<32x128xf32>, vector<2x128xf32> -> vector<2x128xf32>
    %212 = arith.addf %210, %211 : vector<2x128xf32>
    %cst_99 = arith.constant 5.000000e-01 : f32
    %213 = vector.broadcast %cst_99 : f32 to vector<2x128xf32>
    %214 = arith.mulf %213, %212 : vector<2x128xf32>
    %215 = math.tanh %214 : vector<2x128xf32>
    %cst_100 = arith.constant 1.000000e+00 : f32
    %216 = vector.broadcast %cst_100 : f32 to vector<2x128xf32>
    %217 = arith.addf %215, %216 : vector<2x128xf32>
    %cst_101 = arith.constant 5.000000e-01 : f32
    %218 = vector.broadcast %cst_101 : f32 to vector<2x128xf32>
    %219 = arith.mulf %218, %217 : vector<2x128xf32>
    %220 = math.tanh %212 : vector<2x128xf32>
    %221 = vector.extract_strided_slice %219 {offsets = [0, 0], sizes = [2, 32], strides = [1, 1]} : vector<2x128xf32> to vector<2x32xf32>
    %222 = vector.extract_strided_slice %219 {offsets = [0, 32], sizes = [2, 32], strides = [1, 1]} : vector<2x128xf32> to vector<2x32xf32>
    %223 = vector.extract_strided_slice %220 {offsets = [0, 64], sizes = [2, 32], strides = [1, 1]} : vector<2x128xf32> to vector<2x32xf32>
    %224 = vector.extract_strided_slice %219 {offsets = [0, 96], sizes = [2, 32], strides = [1, 1]} : vector<2x128xf32> to vector<2x32xf32>
    %225 = arith.mulf %222, %184 : vector<2x32xf32>
    %226 = arith.mulf %221, %223 : vector<2x32xf32>
    %227 = arith.addf %225, %226 : vector<2x32xf32>
    %228 = math.tanh %227 : vector<2x32xf32>
    %229 = arith.mulf %224, %228 : vector<2x32xf32>
    %230 = tpu.concatenate %229, %206 in 1 : vector<2x32xf32>, vector<2x32xf32> -> vector<2x64xf32>
    %cst_102 = arith.constant dense<0.000000e+00> : vector<2x128xf32>
    %231 = tpu.matmul %230, %72, %cst_102 {dimension_numbers = #tpu.dot_dimension_numbers<[1], [0], [0], [1], [0, 0, 1, 1], [], []>} : vector<2x64xf32>, vector<64x128xf32>, vector<2x128xf32> -> vector<2x128xf32>
    %232 = arith.addf %231, %76 : vector<2x128xf32>
    %cst_103 = arith.constant 5.000000e-01 : f32
    %233 = vector.broadcast %cst_103 : f32 to vector<2x128xf32>
    %234 = arith.mulf %233, %232 : vector<2x128xf32>
    %235 = math.tanh %234 : vector<2x128xf32>
    %cst_104 = arith.constant 1.000000e+00 : f32
    %236 = vector.broadcast %cst_104 : f32 to vector<2x128xf32>
    %237 = arith.addf %235, %236 : vector<2x128xf32>
    %cst_105 = arith.constant 5.000000e-01 : f32
    %238 = vector.broadcast %cst_105 : f32 to vector<2x128xf32>
    %239 = arith.mulf %238, %237 : vector<2x128xf32>
    %240 = math.tanh %232 : vector<2x128xf32>
    %241 = vector.extract_strided_slice %239 {offsets = [0, 0], sizes = [2, 32], strides = [1, 1]} : vector<2x128xf32> to vector<2x32xf32>
    %242 = vector.extract_strided_slice %239 {offsets = [0, 32], sizes = [2, 32], strides = [1, 1]} : vector<2x128xf32> to vector<2x32xf32>
    %243 = vector.extract_strided_slice %240 {offsets = [0, 64], sizes = [2, 32], strides = [1, 1]} : vector<2x128xf32> to vector<2x32xf32>
    %244 = vector.extract_strided_slice %239 {offsets = [0, 96], sizes = [2, 32], strides = [1, 1]} : vector<2x128xf32> to vector<2x32xf32>
    %245 = arith.mulf %242, %204 : vector<2x32xf32>
    %246 = arith.mulf %241, %243 : vector<2x32xf32>
    %247 = arith.addf %245, %246 : vector<2x32xf32>
    %248 = math.tanh %247 : vector<2x32xf32>
    %249 = arith.mulf %244, %248 : vector<2x32xf32>
    %cst_106 = arith.constant dense<0.000000e+00> : vector<2x128xf32>
    %250 = tpu.matmul %249, %73, %cst_106 {dimension_numbers = #tpu.dot_dimension_numbers<[1], [0], [0], [1], [0, 0, 1, 1], [], []>} : vector<2x32xf32>, vector<32x128xf32>, vector<2x128xf32> -> vector<2x128xf32>
    %251 = arith.addf %250, %79 : vector<2x128xf32>
    %c6_107 = arith.constant 6 : index
    %c0_108 = arith.constant 0 : index
    %252 = vector.load %arg9[%c6_107, %c0_108] : memref<16x128xf32, #tpu.memory_space<vmem>>, vector<2x128xf32>
    tpu.vector_store %arg9[%c6_107, %c0_108], %251 {strides = array<i32>} : memref<16x128xf32, #tpu.memory_space<vmem>>, vector<2x128xf32>,
    %253 = vector.extract_strided_slice %70 {offsets = [8, 0], sizes = [2, 128], strides = [1, 1]} : vector<16x128xf32> to vector<2x128xf32>
    %cst_109 = arith.constant dense<0.000000e+00> : vector<2x128xf32>
    %254 = tpu.matmul %229, %71, %cst_109 {dimension_numbers = #tpu.dot_dimension_numbers<[1], [0], [0], [1], [0, 0, 1, 1], [], []>} : vector<2x32xf32>, vector<32x128xf32>, vector<2x128xf32> -> vector<2x128xf32>
    %255 = arith.addf %253, %254 : vector<2x128xf32>
    %cst_110 = arith.constant 5.000000e-01 : f32
    %256 = vector.broadcast %cst_110 : f32 to vector<2x128xf32>
    %257 = arith.mulf %256, %255 : vector<2x128xf32>
    %258 = math.tanh %257 : vector<2x128xf32>
    %cst_111 = arith.constant 1.000000e+00 : f32
    %259 = vector.broadcast %cst_111 : f32 to vector<2x128xf32>
    %260 = arith.addf %258, %259 : vector<2x128xf32>
    %cst_112 = arith.constant 5.000000e-01 : f32
    %261 = vector.broadcast %cst_112 : f32 to vector<2x128xf32>
    %262 = arith.mulf %261, %260 : vector<2x128xf32>
    %263 = math.tanh %255 : vector<2x128xf32>
    %264 = vector.extract_strided_slice %262 {offsets = [0, 0], sizes = [2, 32], strides = [1, 1]} : vector<2x128xf32> to vector<2x32xf32>
    %265 = vector.extract_strided_slice %262 {offsets = [0, 32], sizes = [2, 32], strides = [1, 1]} : vector<2x128xf32> to vector<2x32xf32>
    %266 = vector.extract_strided_slice %263 {offsets = [0, 64], sizes = [2, 32], strides = [1, 1]} : vector<2x128xf32> to vector<2x32xf32>
    %267 = vector.extract_strided_slice %262 {offsets = [0, 96], sizes = [2, 32], strides = [1, 1]} : vector<2x128xf32> to vector<2x32xf32>
    %268 = arith.mulf %265, %227 : vector<2x32xf32>
    %269 = arith.mulf %264, %266 : vector<2x32xf32>
    %270 = arith.addf %268, %269 : vector<2x32xf32>
    %271 = math.tanh %270 : vector<2x32xf32>
    %272 = arith.mulf %267, %271 : vector<2x32xf32>
    %273 = tpu.concatenate %272, %249 in 1 : vector<2x32xf32>, vector<2x32xf32> -> vector<2x64xf32>
    %cst_113 = arith.constant dense<0.000000e+00> : vector<2x128xf32>
    %274 = tpu.matmul %273, %72, %cst_113 {dimension_numbers = #tpu.dot_dimension_numbers<[1], [0], [0], [1], [0, 0, 1, 1], [], []>} : vector<2x64xf32>, vector<64x128xf32>, vector<2x128xf32> -> vector<2x128xf32>
    %275 = arith.addf %274, %76 : vector<2x128xf32>
    %cst_114 = arith.constant 5.000000e-01 : f32
    %276 = vector.broadcast %cst_114 : f32 to vector<2x128xf32>
    %277 = arith.mulf %276, %275 : vector<2x128xf32>
    %278 = math.tanh %277 : vector<2x128xf32>
    %cst_115 = arith.constant 1.000000e+00 : f32
    %279 = vector.broadcast %cst_115 : f32 to vector<2x128xf32>
    %280 = arith.addf %278, %279 : vector<2x128xf32>
    %cst_116 = arith.constant 5.000000e-01 : f32
    %281 = vector.broadcast %cst_116 : f32 to vector<2x128xf32>
    %282 = arith.mulf %281, %280 : vector<2x128xf32>
    %283 = math.tanh %275 : vector<2x128xf32>
    %284 = vector.extract_strided_slice %282 {offsets = [0, 0], sizes = [2, 32], strides = [1, 1]} : vector<2x128xf32> to vector<2x32xf32>
    %285 = vector.extract_strided_slice %282 {offsets = [0, 32], sizes = [2, 32], strides = [1, 1]} : vector<2x128xf32> to vector<2x32xf32>
    %286 = vector.extract_strided_slice %283 {offsets = [0, 64], sizes = [2, 32], strides = [1, 1]} : vector<2x128xf32> to vector<2x32xf32>
    %287 = vector.extract_strided_slice %282 {offsets = [0, 96], sizes = [2, 32], strides = [1, 1]} : vector<2x128xf32> to vector<2x32xf32>
    %288 = arith.mulf %285, %247 : vector<2x32xf32>
    %289 = arith.mulf %284, %286 : vector<2x32xf32>
    %290 = arith.addf %288, %289 : vector<2x32xf32>
    %291 = math.tanh %290 : vector<2x32xf32>
    %292 = arith.mulf %287, %291 : vector<2x32xf32>
    %cst_117 = arith.constant dense<0.000000e+00> : vector<2x128xf32>
    %293 = tpu.matmul %292, %73, %cst_117 {dimension_numbers = #tpu.dot_dimension_numbers<[1], [0], [0], [1], [0, 0, 1, 1], [], []>} : vector<2x32xf32>, vector<32x128xf32>, vector<2x128xf32> -> vector<2x128xf32>
    %294 = arith.addf %293, %79 : vector<2x128xf32>
    %c8_118 = arith.constant 8 : index
    %c0_119 = arith.constant 0 : index
    %295 = vector.load %arg9[%c8_118, %c0_119] : memref<16x128xf32, #tpu.memory_space<vmem>>, vector<2x128xf32>
    tpu.vector_store %arg9[%c8_118, %c0_119], %294 {strides = array<i32>} : memref<16x128xf32, #tpu.memory_space<vmem>>, vector<2x128xf32>,
    %296 = vector.extract_strided_slice %70 {offsets = [10, 0], sizes = [2, 128], strides = [1, 1]} : vector<16x128xf32> to vector<2x128xf32>
    %cst_120 = arith.constant dense<0.000000e+00> : vector<2x128xf32>
    %297 = tpu.matmul %272, %71, %cst_120 {dimension_numbers = #tpu.dot_dimension_numbers<[1], [0], [0], [1], [0, 0, 1, 1], [], []>} : vector<2x32xf32>, vector<32x128xf32>, vector<2x128xf32> -> vector<2x128xf32>
    %298 = arith.addf %296, %297 : vector<2x128xf32>
    %cst_121 = arith.constant 5.000000e-01 : f32
    %299 = vector.broadcast %cst_121 : f32 to vector<2x128xf32>
    %300 = arith.mulf %299, %298 : vector<2x128xf32>
    %301 = math.tanh %300 : vector<2x128xf32>
    %cst_122 = arith.constant 1.000000e+00 : f32
    %302 = vector.broadcast %cst_122 : f32 to vector<2x128xf32>
    %303 = arith.addf %301, %302 : vector<2x128xf32>
    %cst_123 = arith.constant 5.000000e-01 : f32
    %304 = vector.broadcast %cst_123 : f32 to vector<2x128xf32>
    %305 = arith.mulf %304, %303 : vector<2x128xf32>
    %306 = math.tanh %298 : vector<2x128xf32>
    %307 = vector.extract_strided_slice %305 {offsets = [0, 0], sizes = [2, 32], strides = [1, 1]} : vector<2x128xf32> to vector<2x32xf32>
    %308 = vector.extract_strided_slice %305 {offsets = [0, 32], sizes = [2, 32], strides = [1, 1]} : vector<2x128xf32> to vector<2x32xf32>
    %309 = vector.extract_strided_slice %306 {offsets = [0, 64], sizes = [2, 32], strides = [1, 1]} : vector<2x128xf32> to vector<2x32xf32>
    %310 = vector.extract_strided_slice %305 {offsets = [0, 96], sizes = [2, 32], strides = [1, 1]} : vector<2x128xf32> to vector<2x32xf32>
    %311 = arith.mulf %308, %270 : vector<2x32xf32>
    %312 = arith.mulf %307, %309 : vector<2x32xf32>
    %313 = arith.addf %311, %312 : vector<2x32xf32>
    %314 = math.tanh %313 : vector<2x32xf32>
    %315 = arith.mulf %310, %314 : vector<2x32xf32>
    %316 = tpu.concatenate %315, %292 in 1 : vector<2x32xf32>, vector<2x32xf32> -> vector<2x64xf32>
    %cst_124 = arith.constant dense<0.000000e+00> : vector<2x128xf32>
    %317 = tpu.matmul %316, %72, %cst_124 {dimension_numbers = #tpu.dot_dimension_numbers<[1], [0], [0], [1], [0, 0, 1, 1], [], []>} : vector<2x64xf32>, vector<64x128xf32>, vector<2x128xf32> -> vector<2x128xf32>
    %318 = arith.addf %317, %76 : vector<2x128xf32>
    %cst_125 = arith.constant 5.000000e-01 : f32
    %319 = vector.broadcast %cst_125 : f32 to vector<2x128xf32>
    %320 = arith.mulf %319, %318 : vector<2x128xf32>
    %321 = math.tanh %320 : vector<2x128xf32>
    %cst_126 = arith.constant 1.000000e+00 : f32
    %322 = vector.broadcast %cst_126 : f32 to vector<2x128xf32>
    %323 = arith.addf %321, %322 : vector<2x128xf32>
    %cst_127 = arith.constant 5.000000e-01 : f32
    %324 = vector.broadcast %cst_127 : f32 to vector<2x128xf32>
    %325 = arith.mulf %324, %323 : vector<2x128xf32>
    %326 = math.tanh %318 : vector<2x128xf32>
    %327 = vector.extract_strided_slice %325 {offsets = [0, 0], sizes = [2, 32], strides = [1, 1]} : vector<2x128xf32> to vector<2x32xf32>
    %328 = vector.extract_strided_slice %325 {offsets = [0, 32], sizes = [2, 32], strides = [1, 1]} : vector<2x128xf32> to vector<2x32xf32>
    %329 = vector.extract_strided_slice %326 {offsets = [0, 64], sizes = [2, 32], strides = [1, 1]} : vector<2x128xf32> to vector<2x32xf32>
    %330 = vector.extract_strided_slice %325 {offsets = [0, 96], sizes = [2, 32], strides = [1, 1]} : vector<2x128xf32> to vector<2x32xf32>
    %331 = arith.mulf %328, %290 : vector<2x32xf32>
    %332 = arith.mulf %327, %329 : vector<2x32xf32>
    %333 = arith.addf %331, %332 : vector<2x32xf32>
    %334 = math.tanh %333 : vector<2x32xf32>
    %335 = arith.mulf %330, %334 : vector<2x32xf32>
    %cst_128 = arith.constant dense<0.000000e+00> : vector<2x128xf32>
    %336 = tpu.matmul %335, %73, %cst_128 {dimension_numbers = #tpu.dot_dimension_numbers<[1], [0], [0], [1], [0, 0, 1, 1], [], []>} : vector<2x32xf32>, vector<32x128xf32>, vector<2x128xf32> -> vector<2x128xf32>
    %337 = arith.addf %336, %79 : vector<2x128xf32>
    %c10_129 = arith.constant 10 : index
    %c0_130 = arith.constant 0 : index
    %338 = vector.load %arg9[%c10_129, %c0_130] : memref<16x128xf32, #tpu.memory_space<vmem>>, vector<2x128xf32>
    tpu.vector_store %arg9[%c10_129, %c0_130], %337 {strides = array<i32>} : memref<16x128xf32, #tpu.memory_space<vmem>>, vector<2x128xf32>,
    %339 = vector.extract_strided_slice %70 {offsets = [12, 0], sizes = [2, 128], strides = [1, 1]} : vector<16x128xf32> to vector<2x128xf32>
    %cst_131 = arith.constant dense<0.000000e+00> : vector<2x128xf32>
    %340 = tpu.matmul %315, %71, %cst_131 {dimension_numbers = #tpu.dot_dimension_numbers<[1], [0], [0], [1], [0, 0, 1, 1], [], []>} : vector<2x32xf32>, vector<32x128xf32>, vector<2x128xf32> -> vector<2x128xf32>
    %341 = arith.addf %339, %340 : vector<2x128xf32>
    %cst_132 = arith.constant 5.000000e-01 : f32
    %342 = vector.broadcast %cst_132 : f32 to vector<2x128xf32>
    %343 = arith.mulf %342, %341 : vector<2x128xf32>
    %344 = math.tanh %343 : vector<2x128xf32>
    %cst_133 = arith.constant 1.000000e+00 : f32
    %345 = vector.broadcast %cst_133 : f32 to vector<2x128xf32>
    %346 = arith.addf %344, %345 : vector<2x128xf32>
    %cst_134 = arith.constant 5.000000e-01 : f32
    %347 = vector.broadcast %cst_134 : f32 to vector<2x128xf32>
    %348 = arith.mulf %347, %346 : vector<2x128xf32>
    %349 = math.tanh %341 : vector<2x128xf32>
    %350 = vector.extract_strided_slice %348 {offsets = [0, 0], sizes = [2, 32], strides = [1, 1]} : vector<2x128xf32> to vector<2x32xf32>
    %351 = vector.extract_strided_slice %348 {offsets = [0, 32], sizes = [2, 32], strides = [1, 1]} : vector<2x128xf32> to vector<2x32xf32>
    %352 = vector.extract_strided_slice %349 {offsets = [0, 64], sizes = [2, 32], strides = [1, 1]} : vector<2x128xf32> to vector<2x32xf32>
    %353 = vector.extract_strided_slice %348 {offsets = [0, 96], sizes = [2, 32], strides = [1, 1]} : vector<2x128xf32> to vector<2x32xf32>
    %354 = arith.mulf %351, %313 : vector<2x32xf32>
    %355 = arith.mulf %350, %352 : vector<2x32xf32>
    %356 = arith.addf %354, %355 : vector<2x32xf32>
    %357 = math.tanh %356 : vector<2x32xf32>
    %358 = arith.mulf %353, %357 : vector<2x32xf32>
    %359 = tpu.concatenate %358, %335 in 1 : vector<2x32xf32>, vector<2x32xf32> -> vector<2x64xf32>
    %cst_135 = arith.constant dense<0.000000e+00> : vector<2x128xf32>
    %360 = tpu.matmul %359, %72, %cst_135 {dimension_numbers = #tpu.dot_dimension_numbers<[1], [0], [0], [1], [0, 0, 1, 1], [], []>} : vector<2x64xf32>, vector<64x128xf32>, vector<2x128xf32> -> vector<2x128xf32>
    %361 = arith.addf %360, %76 : vector<2x128xf32>
    %cst_136 = arith.constant 5.000000e-01 : f32
    %362 = vector.broadcast %cst_136 : f32 to vector<2x128xf32>
    %363 = arith.mulf %362, %361 : vector<2x128xf32>
    %364 = math.tanh %363 : vector<2x128xf32>
    %cst_137 = arith.constant 1.000000e+00 : f32
    %365 = vector.broadcast %cst_137 : f32 to vector<2x128xf32>
    %366 = arith.addf %364, %365 : vector<2x128xf32>
    %cst_138 = arith.constant 5.000000e-01 : f32
    %367 = vector.broadcast %cst_138 : f32 to vector<2x128xf32>
    %368 = arith.mulf %367, %366 : vector<2x128xf32>
    %369 = math.tanh %361 : vector<2x128xf32>
    %370 = vector.extract_strided_slice %368 {offsets = [0, 0], sizes = [2, 32], strides = [1, 1]} : vector<2x128xf32> to vector<2x32xf32>
    %371 = vector.extract_strided_slice %368 {offsets = [0, 32], sizes = [2, 32], strides = [1, 1]} : vector<2x128xf32> to vector<2x32xf32>
    %372 = vector.extract_strided_slice %369 {offsets = [0, 64], sizes = [2, 32], strides = [1, 1]} : vector<2x128xf32> to vector<2x32xf32>
    %373 = vector.extract_strided_slice %368 {offsets = [0, 96], sizes = [2, 32], strides = [1, 1]} : vector<2x128xf32> to vector<2x32xf32>
    %374 = arith.mulf %371, %333 : vector<2x32xf32>
    %375 = arith.mulf %370, %372 : vector<2x32xf32>
    %376 = arith.addf %374, %375 : vector<2x32xf32>
    %377 = math.tanh %376 : vector<2x32xf32>
    %378 = arith.mulf %373, %377 : vector<2x32xf32>
    %cst_139 = arith.constant dense<0.000000e+00> : vector<2x128xf32>
    %379 = tpu.matmul %378, %73, %cst_139 {dimension_numbers = #tpu.dot_dimension_numbers<[1], [0], [0], [1], [0, 0, 1, 1], [], []>} : vector<2x32xf32>, vector<32x128xf32>, vector<2x128xf32> -> vector<2x128xf32>
    %380 = arith.addf %379, %79 : vector<2x128xf32>
    %c12_140 = arith.constant 12 : index
    %c0_141 = arith.constant 0 : index
    %381 = vector.load %arg9[%c12_140, %c0_141] : memref<16x128xf32, #tpu.memory_space<vmem>>, vector<2x128xf32>
    tpu.vector_store %arg9[%c12_140, %c0_141], %380 {strides = array<i32>} : memref<16x128xf32, #tpu.memory_space<vmem>>, vector<2x128xf32>,
    %382 = vector.extract_strided_slice %70 {offsets = [14, 0], sizes = [2, 128], strides = [1, 1]} : vector<16x128xf32> to vector<2x128xf32>
    %cst_142 = arith.constant dense<0.000000e+00> : vector<2x128xf32>
    %383 = tpu.matmul %358, %71, %cst_142 {dimension_numbers = #tpu.dot_dimension_numbers<[1], [0], [0], [1], [0, 0, 1, 1], [], []>} : vector<2x32xf32>, vector<32x128xf32>, vector<2x128xf32> -> vector<2x128xf32>
    %384 = arith.addf %382, %383 : vector<2x128xf32>
    %cst_143 = arith.constant 5.000000e-01 : f32
    %385 = vector.broadcast %cst_143 : f32 to vector<2x128xf32>
    %386 = arith.mulf %385, %384 : vector<2x128xf32>
    %387 = math.tanh %386 : vector<2x128xf32>
    %cst_144 = arith.constant 1.000000e+00 : f32
    %388 = vector.broadcast %cst_144 : f32 to vector<2x128xf32>
    %389 = arith.addf %387, %388 : vector<2x128xf32>
    %cst_145 = arith.constant 5.000000e-01 : f32
    %390 = vector.broadcast %cst_145 : f32 to vector<2x128xf32>
    %391 = arith.mulf %390, %389 : vector<2x128xf32>
    %392 = math.tanh %384 : vector<2x128xf32>
    %393 = vector.extract_strided_slice %391 {offsets = [0, 0], sizes = [2, 32], strides = [1, 1]} : vector<2x128xf32> to vector<2x32xf32>
    %394 = vector.extract_strided_slice %391 {offsets = [0, 32], sizes = [2, 32], strides = [1, 1]} : vector<2x128xf32> to vector<2x32xf32>
    %395 = vector.extract_strided_slice %392 {offsets = [0, 64], sizes = [2, 32], strides = [1, 1]} : vector<2x128xf32> to vector<2x32xf32>
    %396 = vector.extract_strided_slice %391 {offsets = [0, 96], sizes = [2, 32], strides = [1, 1]} : vector<2x128xf32> to vector<2x32xf32>
    %397 = arith.mulf %394, %356 : vector<2x32xf32>
    %398 = arith.mulf %393, %395 : vector<2x32xf32>
    %399 = arith.addf %397, %398 : vector<2x32xf32>
    %400 = math.tanh %399 : vector<2x32xf32>
    %401 = arith.mulf %396, %400 : vector<2x32xf32>
    %402 = tpu.concatenate %401, %378 in 1 : vector<2x32xf32>, vector<2x32xf32> -> vector<2x64xf32>
    %cst_146 = arith.constant dense<0.000000e+00> : vector<2x128xf32>
    %403 = tpu.matmul %402, %72, %cst_146 {dimension_numbers = #tpu.dot_dimension_numbers<[1], [0], [0], [1], [0, 0, 1, 1], [], []>} : vector<2x64xf32>, vector<64x128xf32>, vector<2x128xf32> -> vector<2x128xf32>
    %404 = arith.addf %403, %76 : vector<2x128xf32>
    %cst_147 = arith.constant 5.000000e-01 : f32
    %405 = vector.broadcast %cst_147 : f32 to vector<2x128xf32>
    %406 = arith.mulf %405, %404 : vector<2x128xf32>
    %407 = math.tanh %406 : vector<2x128xf32>
    %cst_148 = arith.constant 1.000000e+00 : f32
    %408 = vector.broadcast %cst_148 : f32 to vector<2x128xf32>
    %409 = arith.addf %407, %408 : vector<2x128xf32>
    %cst_149 = arith.constant 5.000000e-01 : f32
    %410 = vector.broadcast %cst_149 : f32 to vector<2x128xf32>
    %411 = arith.mulf %410, %409 : vector<2x128xf32>
    %412 = math.tanh %404 : vector<2x128xf32>
    %413 = vector.extract_strided_slice %411 {offsets = [0, 0], sizes = [2, 32], strides = [1, 1]} : vector<2x128xf32> to vector<2x32xf32>
    %414 = vector.extract_strided_slice %411 {offsets = [0, 32], sizes = [2, 32], strides = [1, 1]} : vector<2x128xf32> to vector<2x32xf32>
    %415 = vector.extract_strided_slice %412 {offsets = [0, 64], sizes = [2, 32], strides = [1, 1]} : vector<2x128xf32> to vector<2x32xf32>
    %416 = vector.extract_strided_slice %411 {offsets = [0, 96], sizes = [2, 32], strides = [1, 1]} : vector<2x128xf32> to vector<2x32xf32>
    %417 = arith.mulf %414, %376 : vector<2x32xf32>
    %418 = arith.mulf %413, %415 : vector<2x32xf32>
    %419 = arith.addf %417, %418 : vector<2x32xf32>
    %420 = math.tanh %419 : vector<2x32xf32>
    %421 = arith.mulf %416, %420 : vector<2x32xf32>
    %cst_150 = arith.constant dense<0.000000e+00> : vector<2x128xf32>
    %422 = tpu.matmul %421, %73, %cst_150 {dimension_numbers = #tpu.dot_dimension_numbers<[1], [0], [0], [1], [0, 0, 1, 1], [], []>} : vector<2x32xf32>, vector<32x128xf32>, vector<2x128xf32> -> vector<2x128xf32>
    %423 = arith.addf %422, %79 : vector<2x128xf32>
    %c14_151 = arith.constant 14 : index
    %c0_152 = arith.constant 0 : index
    %424 = vector.load %arg9[%c14_151, %c0_152] : memref<16x128xf32, #tpu.memory_space<vmem>>, vector<2x128xf32>
    tpu.vector_store %arg9[%c14_151, %c0_152], %423 {strides = array<i32>} : memref<16x128xf32, #tpu.memory_space<vmem>>, vector<2x128xf32>,
    return
  }
}

</mosaic_0001>

<bundles_post_ra>
// kernel: textchannel_forward.1
= control target key start
LH: loop header
LB: loop body
LE: loop exit
PB: predicated region body
PF: predicated region fallthrough
CT: control target
= control target key end

     0   :  { %14 = vsyncpa [#allocation4], 0  ;;  %s1415_s12 = smov [#allocation3]   ;;  %s1989_s0 = inlined_call_operand.vmem [shape: s32[16], index: 0, kind: input, shape index: {}]   ;;  %s1990_s1 = inlined_call_operand.vmem [shape: f32[64,32], index: 1, kind: input, shape index: {}]   ;;  %s1991_s2 = inlined_call_operand.vmem [shape: f32[32,128], index: 2, kind: input, shape index: {}]   ;;  %s1992_s3 = inlined_call_operand.vmem [shape: f32[32,128], index: 3, kind: input, shape index: {}]   ;;  %s1993_s4 = inlined_call_operand.vmem [shape: f32[1,128], index: 4, kind: input, shape index: {}]   ;;  %s1994_s5 = inlined_call_operand.vmem [shape: f32[64,128], index: 5, kind: input, shape index: {}]   ;;  %s1995_s6 = inlined_call_operand.vmem [shape: f32[1,128], index: 6, kind: input, shape index: {}]   ;;  %s1996_s7 = inlined_call_operand.vmem [shape: f32[32,128], index: 7, kind: input, shape index: {}]   ;;  %s1997_s8 = inlined_call_operand.vmem [shape: f32[1,128], index: 8, kind: input, shape index: {}]   ;;  %s1998_s9 = inlined_call_operand.vmem [shape: f32[16,128], index: 9, kind: output, shape index: {}]  }
   0x1   :  { %s20_s11 = sshll.u32 %s1989_s0, 4  ;;  %s21_s11 = int_to_ptr.vmem [resolvable:$true] %s20_s11 }
   0x2   :  { %23 = dma.vmem_to_smem %s21_s11, 16, %s1415_s12, [#allocation4]  }
   0x3   :  { %1413 = dma.done.wait [#allocation4], 16  }
   0x4   :  { %1414 = vsyncadd [#allocation4], 4294967280 }
   0x5   :  { %44 = sfence }
   0x6   :  { %v117_v0 = vld [vmem:[%s1991_s2 + $0x18] sm:$0xff]  ;;  %v116_v1 = vld [vmem:[%s1991_s2 + $0x10] sm:$0xff]  ;;  %s45_s0 = sld [smem:[#allocation3]]  ;;  %v115_v4 = vld [vmem:[%s1991_s2 + $0x8] sm:$0xff]  ;;  %vm48_vm0 = vcmask 253952   ;;  %v1416_v10 = vmov 0.0  }
   0x7   :  { %v1481_v2 = vld [vmem:[%s1992_s3 + $0x18] sm:$0xff]  ;;  %141 = vmatpush.msra.mxu0 %v117_v0  ;;  %v1487_v3 = vld [vmem:[%s1992_s3 + $0x10] sm:$0xff]  ;;  %s1254_s21 = sld [smem:[#allocation3 + $0x1]]  ;;  %v1495_v5 = vld [vmem:[%s1992_s3 + $0x8] sm:$0xff]  ;;  %vm122_vm1 = vcmask 261120   ;;  %vm227_vm2 = vcmask 523264  }
   0x8   :  { %191 = vmatpush.msra.mxu1 %v1481_v2  ;;  %s1255_s26 = sld [smem:[#allocation3 + $0x2]]  ;;  %v114_v6 = vld [vmem:[%s1991_s2] sm:$0xff]  ;;  %s1417_s2 = smov 64   ;;  %v1567_v35 = vld [vmem:[%s1994_s5 + $0x38] sm:$0xff]  ;;  %v1572_v36 = vld [vmem:[%s1994_s5 + $0x30] sm:$0xff] }
   0x9   :  { %142 = vmatpush.msra.mxu0 %v116_v1  ;;  %s1256_s29 = sld [smem:[#allocation3 + $0x3]]  ;;  %v1504_v7 = vld [vmem:[%s1992_s3] sm:$0xff]  ;;  %239 = vmatpush.msra.mxu2 %v1567_v35  ;;  %v1579_v37 = vld [vmem:[%s1994_s5 + $0x28] sm:$0xff]  ;;  %v1593_v39 = vld [vmem:[%s1994_s5 + $0x18] sm:$0xff] }
   0xa   :  { %192 = vmatpush.msra.mxu1 %v1487_v3  ;;  %s1257_s11 = sld [smem:[#allocation3 + $0x4]]  ;;  %v1552_v19 = vld [vmem:[%s1993_s4] ss:$0 sm:$0xff]  ;;  %s1418_s4 = smov 32   ;;  %v1600_v40 = vld [vmem:[%s1994_s5 + $0x10] sm:$0xff]  ;;  %v1607_v41 = vld [vmem:[%s1994_s5 + $0x8] sm:$0xff] }
   0xb   :  { %143 = vmatpush.msra.mxu0 %v115_v4  ;;  %s1258_s12 = sld [smem:[#allocation3 + $0x5]]  ;;  %240 = vmatpush.msra.mxu2 %v1572_v36  ;;  %v1586_v38 = vld [vmem:[%s1994_s5 + $0x20] sm:$0xff] }
   0xc   :  { %193 = vmatpush.msra.mxu1 %v1495_v5  ;;  %s46_s15 = scalar_lea.vmem %s1990_s1, %s45_s0  ;;  %s1259_s16 = sld [smem:[#allocation3 + $0x6]]  ;;  %v1617_v44 = vld [vmem:[%s1994_s5] sm:$0xff] }
   0xd   :  { %144 = vmatpush.msra.mxu0 %v114_v6  ;;  %v47_v8 = vld [vmem:[%s46_s15] sm:$0x1]  ;;  %s51_s18 = scalar_lea.vmem %s1990_s1, %s1254_s21  ;;  %s1260_s19 = sld [smem:[#allocation3 + $0x7]]  ;;  %241 = vmatpush.msra.mxu2 %v1579_v37 }
   0xe   :  { %194 = vmatpush.msra.mxu1 %v1504_v7  ;;  %49 = vst.msk [vmem:[#allocation2] sm:$0x1] %vm48_vm0, %v47_v8  ;;  %v52_v9 = vld [vmem:[%s51_s18] sm:$0x1]  ;;  %s55_s22 = scalar_lea.vmem %s1990_s1, %s1255_s26  ;;  %s1264_s14 = sld [smem:[#allocation3 + $0xb]] }
   0xf   :  { %195 = vmatmul.f32.vlgmr.msra.gmra.mxu1 %v1416_v10  ;;  %53 = vst.msk [vmem:[#allocation2 + $0x1] sm:$0x1] %vm48_vm0, %v52_v9  ;;  %v56_v11 = vld [vmem:[%s55_s22] sm:$0x1]  ;;  %s59_s24 = scalar_lea.vmem %s1990_s1, %s1256_s29  ;;  %371 = vmatpush.msrb.mxu0 %v1567_v35  ;;  %s1268_s17 = sld [smem:[#allocation3 + $0xf]] }
  0x10   :  { %313 = vmatpush.msrb.mxu1 %v1481_v2  ;;  %57 = vst.msk [vmem:[#allocation2 + $0x2] sm:$0x1] %vm48_vm0, %v56_v11  ;;  %v60_v12 = vld [vmem:[%s59_s24] sm:$0x1]  ;;  %s63_s27 = scalar_lea.vmem %s1990_s1, %s1257_s11  ;;  %242 = vmatpush.msra.mxu2 %v1586_v38  ;;  %s1263_s11 = sld [smem:[#allocation3 + $0xa]] }
  0x11   :  { %61 = vst.msk [vmem:[#allocation2 + $0x3] sm:$0x1] %vm48_vm0, %v60_v12  ;;  %v64_v13 = vld [vmem:[%s63_s27] sm:$0x1]  ;;  %s67_s30 = scalar_lea.vmem %s1990_s1, %s1258_s12  ;;  %372 = vmatpush.msrb.mxu0 %v1572_v36  ;;  %s1266_s12 = sld [smem:[#allocation3 + $0xd]] }
  0x12   :  { %314 = vmatpush.msrb.mxu1 %v1487_v3  ;;  %65 = vst.msk [vmem:[#allocation2 + $0x4] sm:$0x1] %vm48_vm0, %v64_v13  ;;  %v68_v14 = vld [vmem:[%s67_s30] sm:$0x1]  ;;  %s71_s13 = scalar_lea.vmem %s1990_s1, %s1259_s16  ;;  %243 = vmatpush.msra.mxu2 %v1593_v39  ;;  %s1267_s16 = sld [smem:[#allocation3 + $0xe]] }
  0x13   :  { %69 = vst.msk [vmem:[#allocation2 + $0x5] sm:$0x1] %vm48_vm0, %v68_v14  ;;  %v72_v15 = vld [vmem:[%s71_s13] sm:$0x1]  ;;  %s75_s15 = scalar_lea.vmem %s1990_s1, %s1260_s19  ;;  %373 = vmatpush.msrb.mxu0 %v1579_v37  ;;  %s1262_s13 = sld [smem:[#allocation3 + $0x9]] }
  0x14   :  { %315 = vmatpush.msrb.mxu1 %v1495_v5  ;;  %73 = vst.msk [vmem:[#allocation2 + $0x6] sm:$0x1] %vm48_vm0, %v72_v15  ;;  %v76_v16 = vld [vmem:[%s75_s15] sm:$0x1]  ;;  %244 = vmatpush.msra.mxu2 %v1600_v40  ;;  %s1265_s15 = sld [smem:[#allocation3 + $0xc]]  ;;  %s91_s26 = scalar_lea.vmem %s1990_s1, %s1264_s14 }
  0x15   :  { %77 = vst.msk [vmem:[#allocation2 + $0x7] sm:$0x1] %vm48_vm0, %v76_v16  ;;  %374 = vmatpush.msrb.mxu0 %v1586_v38  ;;  %v1655_v47 = vld [vmem:[%s1995_s6] ss:$0 sm:$0xff]  ;;  %s1261_s6 = sld [smem:[#allocation3 + $0x8]] }
  0x16   :  { %316 = vmatpush.msrb.mxu1 %v1504_v7  ;;  %245 = vmatpush.msra.mxu2 %v1607_v41  ;;  %s87_s21 = scalar_lea.vmem %s1990_s1, %s1263_s11 }
  0x17   :  { %375 = vmatpush.msrb.mxu0 %v1593_v39 }
  0x18   :  { %448 = vmatpush.msra.mxu1 %v1481_v2  ;;  %246 = vmatpush.msra.mxu2 %v1617_v44  ;;  %s103_s18 = scalar_lea.vmem %s1990_s1, %s1267_s16 }
  0x19   :  { %376 = vmatpush.msrb.mxu0 %v1600_v40  ;;  %s83_s0 = scalar_lea.vmem %s1990_s1, %s1262_s13 }
  0x1a   :  { %449 = vmatpush.msra.mxu1 %v1487_v3  ;;  %506 = vmatpush.msrb.mxu2 %v1567_v35  ;;  %s95_s29 = scalar_lea.vmem %s1990_s1, %s1265_s15  ;;  %s107_s15 = scalar_lea.vmem %s1990_s1, %s1268_s17 }
  0x1b   :  { %377 = vmatpush.msrb.mxu0 %v1607_v41  ;;  %s79_s3 = scalar_lea.vmem %s1990_s1, %s1261_s6  ;;  %s99_s6 = scalar_lea.vmem %s1990_s1, %s1266_s12 }
  0x1c   :  { %450 = vmatpush.msra.mxu1 %v1495_v5  ;;  %v110_v17 = vld [vmem:[#allocation2] sm:$0xff]  ;;  %507 = vmatpush.msrb.mxu2 %v1572_v36 }
  0x1d   :  { %1301 = vtanh.f32 %v110_v17  ;;  %378 = vmatpush.msrb.mxu0 %v1617_v44 }
  0x1e   :  { %451 = vmatpush.msra.mxu1 %v1504_v7  ;;  %508 = vmatpush.msrb.mxu2 %v1579_v37 }
  0x20   :  { %509 = vmatpush.msrb.mxu2 %v1586_v38 }
  0x22   :  { %510 = vmatpush.msrb.mxu2 %v1593_v39 }
  0x23   :  { %v1302_v18 = vpop.eup %1301 }
  0x24   :  { %1269 = vmatmul.msk.f32.vlgmr.msra.gmra.mxu0 %vm122_vm1, %v1302_v18  ;;  %511 = vmatpush.msrb.mxu2 %v1600_v40 }
  0x25   :  { %583 = vmatpush.msra.mxu0 %v1481_v2 }
  0x26   :  { %512 = vmatpush.msrb.mxu2 %v1607_v41 }
  0x27   :  { %584 = vmatpush.msra.mxu0 %v1487_v3 }
  0x28   :  { %513 = vmatpush.msrb.mxu2 %v1617_v44 }
  0x29   :  { %585 = vmatpush.msra.mxu0 %v1495_v5 }
  0x2b   :  { %586 = vmatpush.msra.mxu0 %v1504_v7 }
  0x8c   :  { %v196_v21 = vpop.f32.mrf.mxu1 }
  0xa1   :  { %v146_v20 = vpop.f32.mrf.mxu0 }
  0xa2   :  { %v1555_v22 = vadd.f32 %v1552_v19, %v146_v20 }
  0xa4   :  { %v199_v23 = vadd.f32 %v196_v21, %v1555_v22 }
  0xa6   :  { %1303 = vtanh.f32 %v199_v23  ;;  %v200_v25 = vmul.f32 0.5, %v199_v23 }
  0xa8   :  { %1305 = vtanh.f32 %v200_v25  ;;  %v84_v25 = vld [vmem:[%s83_s0] sm:$0x1] }
  0xa9   :  { %85 = vst.msk [vmem:[#allocation2 + $0x9] sm:$0x1] %vm48_vm0, %v84_v25 }
  0xac   :  { %v1304_v24 = vpop.eup %1303 }
  0xad   :  { %207 = vrot.lane.b32.xlu0 %v1304_v24, %s1417_s2  ;;  %v80_v24 = vld [vmem:[%s79_s3] sm:$0x1] }
  0xae   :  { %v1306_v26 = vpop.eup %1305  ;;  %81 = vst.msk [vmem:[#allocation2 + $0x8] sm:$0x1] %vm48_vm0, %v80_v24 }
  0xaf   :  { %v202_v27 = vadd.f32 1.0, %v1306_v26  ;;  %v88_v26 = vld [vmem:[%s87_s21] sm:$0x1] }
  0xb0   :  { %89 = vst.msk [vmem:[#allocation2 + $0xa] sm:$0x1] %vm48_vm0, %v88_v26 }
  0xb1   :  { %v203_v28 = vmul.f32 0.5, %v202_v27  ;;  %v92_v27 = vld [vmem:[%s91_s26] sm:$0x1] }
  0xb2   :  { %93 = vst.msk [vmem:[#allocation2 + $0xb] sm:$0x1] %vm48_vm0, %v92_v27 }
  0xb3   :  { %v205_v31 = vmul.f32 0.0, %v203_v28 }
 0x11f   :  { %v208_v29 = vpop.permute.xlu0 %207 }
 0x120   :  { %v210_v30 = vmul.f32 %v208_v29, %v203_v28  ;;  %v100_v29 = vld [vmem:[%s99_s6] sm:$0x1] }
 0x121   :  { %101 = vst.msk [vmem:[#allocation2 + $0xd] sm:$0x1] %vm48_vm0, %v100_v29 }
 0x122   :  { %212 = vrot.lane.b32.xlu0 %v210_v30, %s1418_s4  ;;  %v104_v30 = vld [vmem:[%s103_s18] sm:$0x1] }
 0x123   :  { %105 = vst.msk [vmem:[#allocation2 + $0xe] sm:$0x1] %vm48_vm0, %v104_v30 }
 0x194   :  { %v213_v32 = vpop.permute.xlu0 %212 }
 0x195   :  { %v1560_v33 = vadd.f32 %v213_v32, %v205_v31  ;;  %v108_v31 = vld [vmem:[%s107_s15] sm:$0x1] }
 0x196   :  { %109 = vst.msk [vmem:[#allocation2 + $0xf] sm:$0x1] %vm48_vm0, %v108_v31 }
 0x197   :  { %1307 = vtanh.f32 %v1560_v33  ;;  %v331_v10 = vrot.slane %v1560_v33, 6 }
 0x19d   :  { %v1308_v34 = vpop.eup %1307 }
 0x19e   :  { %218 = vrot.lane.b32.xlu1 %v1308_v34, %s1417_s2 }
 0x210   :  { %v219_v42 = vpop.permute.xlu1 %218 }
 0x211   :  { %v221_v43 = vmul.f32 %v219_v42, %v203_v28  ;;  %v96_v28 = vld [vmem:[%s95_s29] sm:$0x1] }
 0x212   :  { %97 = vst.msk [vmem:[#allocation2 + $0xc] sm:$0x1] %vm48_vm0, %v96_v28 }
 0x213   :  { %223 = vrot.lane.b32.xlu1 %v221_v43, %s1418_s4 }
 0x219   :  { %v111_v32 = vld [vmem:[#allocation2 + $0x8] sm:$0xff] }
 0x285   :  { %v224_v45 = vpop.permute.xlu1 %223 }
 0x286   :  { %1273 = vmatmul.msk.f32.vlgmr.msrb.gmra.mxu1 %vm122_vm1, %v224_v45  ;;  %v226_v46 = vsel %vm122_vm1, %v224_v45, 0.0 }
 0x287   :  { %1271 = vmatmul.msk.f32.vlgmr.msra.gmra.mxu2 %vm227_vm2, %v226_v46  ;;  %641 = vmatpush.msrb.mxu1 %v1567_v35 }
 0x288   :  { %771 = vmatpush.msra.mxu2 %v1567_v35 }
 0x289   :  { %642 = vmatpush.msrb.mxu1 %v1572_v36 }
 0x28a   :  { %772 = vmatpush.msra.mxu2 %v1572_v36 }
 0x28b   :  { %643 = vmatpush.msrb.mxu1 %v1579_v37 }
 0x28c   :  { %773 = vmatpush.msra.mxu2 %v1579_v37 }
 0x28d   :  { %644 = vmatpush.msrb.mxu1 %v1586_v38 }
 0x28e   :  { %774 = vmatpush.msra.mxu2 %v1586_v38 }
 0x28f   :  { %645 = vmatpush.msrb.mxu1 %v1593_v39 }
 0x290   :  { %775 = vmatpush.msra.mxu2 %v1593_v39 }
 0x291   :  { %646 = vmatpush.msrb.mxu1 %v1600_v40 }
 0x292   :  { %776 = vmatpush.msra.mxu2 %v1600_v40 }
 0x293   :  { %647 = vmatpush.msrb.mxu1 %v1607_v41 }
 0x294   :  { %777 = vmatpush.msra.mxu2 %v1607_v41 }
 0x295   :  { %648 = vmatpush.msrb.mxu1 %v1617_v44 }
 0x296   :  { %778 = vmatpush.msra.mxu2 %v1617_v44 }
 0x303   :  { %v318_v48 = vpop.f32.mrf.mxu1 }
 0x304   :  { %v322_v51 = vrot.slane %v318_v48, 6 }
 0x306   :  { %v324_v52 = vadd.f32 %v322_v51, %v1555_v22 }
 0x308   :  { %v325_v56 = vmul.f32 0.5, %v324_v52 }
 0x30a   :  { %v248_v49 = vpop.f32.mrf.mxu2 }
 0x30b   :  { %v249_v50 = vadd.f32 %v1655_v47, %v248_v49 }
 0x30d   :  { %1309 = vtanh.f32 %v249_v50  ;;  %v251_v55 = vmul.f32 0.5, %v249_v50 }
 0x30e   :  { %1311 = vtanh.f32 %v324_v52 }
 0x30f   :  { %1313 = vtanh.f32 %v251_v55 }
 0x310   :  { %1315 = vtanh.f32 %v325_v56 }
 0x313   :  { %v1310_v53 = vpop.eup %1309 }
 0x314   :  { %258 = vrot.lane.b32.xlu2 %v1310_v53, %s1417_s2  ;;  %v1312_v54 = vpop.eup %1311 }
 0x315   :  { %v1314_v57 = vpop.eup %1313 }
 0x316   :  { %v253_v58 = vadd.f32 1.0, %v1314_v57  ;;  %v1316_v60 = vpop.eup %1315 }
 0x317   :  { %v327_v63 = vadd.f32 1.0, %v1316_v60 }
 0x318   :  { %v254_v59 = vmul.f32 0.5, %v253_v58 }
 0x319   :  { %v328_v0 = vmul.f32 0.5, %v327_v63 }
 0x31a   :  { %v256_v6 = vmul.f32 0.0, %v254_v59 }
 0x31b   :  { %v333_v11 = vmul.f32 %v331_v10, %v328_v0 }
 0x31c   :  { %335 = vrot.lane.b32.xlu2 %v1312_v54, %s1417_s2 }
 0x36e   :  { %v259_v61 = vpop.permute.xlu2 %258 }
 0x36f   :  { %v261_v62 = vmul.f32 %v259_v61, %v254_v59 }
 0x371   :  { %263 = vrot.lane.b32.xlu0 %v261_v62, %s1418_s4 }
 0x376   :  { %v336_v1 = vpop.permute.xlu2 %335 }
 0x377   :  { %v338_v4 = vmul.f32 %v336_v1, %v328_v0 }
 0x379   :  { %340 = vrot.lane.b32.xlu1 %v338_v4, %s1418_s4 }
 0x3e3   :  { %v264_v8 = vpop.permute.xlu0 %263 }
 0x3e4   :  { %v1663_v9 = vadd.f32 %v264_v8, %v256_v6 }
 0x3e6   :  { %1317 = vtanh.f32 %v1663_v9 }
 0x3eb   :  { %v341_v12 = vpop.permute.xlu1 %340 }
 0x3ec   :  { %v1318_v13 = vpop.eup %1317  ;;  %v1667_v14 = vadd.f32 %v341_v12, %v333_v11 }
 0x3ed   :  { %269 = vrot.lane.b32.xlu2 %v1318_v13, %s1417_s2 }
 0x3ee   :  { %1319 = vtanh.f32 %v1667_v14  ;;  %v466_v8 = vrot.slane %v1667_v14, 6 }
 0x3ef   :  { %1321 = vtanh.f32 %v111_v32 }
 0x3f4   :  { %v1320_v15 = vpop.eup %1319 }
 0x3f5   :  { %346 = vrot.lane.b32.xlu0 %v1320_v15, %s1417_s2  ;;  %v1322_v33 = vpop.eup %1321 }
 0x3f6   :  { %1270 = vmatmul.msk.f32.gmra.mxu0 %vm122_vm1, %v1322_v33 }
 0x447   :  { %v270_v16 = vpop.permute.xlu2 %269 }
 0x448   :  { %v1672_v17 = vmul.f32 %v270_v16, %v254_v59 }
 0x44a   :  { %v354_v18 = vrot.slane %v1672_v17, 6 }
 0x44c   :  { %355 = vrot.lane.b32.xlu2 %v354_v18, %s1417_s2 }
 0x467   :  { %v347_v20 = vpop.permute.xlu0 %346 }
 0x468   :  { %v349_v21 = vmul.f32 %v347_v20, %v328_v0 }
 0x46a   :  { %v431_v23 = vrot.slane %v349_v21, 2  ;;  %351 = vrot.lane.b32.xlu1 %v349_v21, %s1418_s4 }
 0x46c   :  { %432 = vrot.lane.b32.xlu0 %v431_v23, %s1418_s4 }
 0x473   :  { %v1726_v48 = vpop.f32.mrf.mxu0 }
 0x4a6   :  { %v356_v34 = vpop.permute.xlu2 %355 }
 0x4dc   :  { %v352_v42 = vpop.permute.xlu1 %351 }
 0x4dd   :  { %v358_v43 = vsel %vm122_vm1, %v352_v42, %v356_v34 }
 0x4de   :  { %v360_v45 = vrot.slane %v358_v43, 2  ;;  %v433_v46 = vpop.permute.xlu0 %432 }
 0x4df   :  { %1276 = vmatmul.msk.f32.vlgmr.msra.gmra.mxu1 %vm122_vm1, %v433_v46 }
 0x4e0   :  { %1274 = vmatmul.msk.f32.vlgmr.msrb.gmra.mxu0 %vm227_vm2, %v360_v45  ;;  %903 = vmatpush.msra.mxu1 %v1567_v35 }
 0x4e1   :  { %718 = vmatpush.msrb.mxu0 %v1481_v2 }
 0x4e2   :  { %904 = vmatpush.msra.mxu1 %v1572_v36 }
 0x4e3   :  { %719 = vmatpush.msrb.mxu0 %v1487_v3 }
 0x4e4   :  { %905 = vmatpush.msra.mxu1 %v1579_v37 }
 0x4e5   :  { %720 = vmatpush.msrb.mxu0 %v1495_v5 }
 0x4e6   :  { %906 = vmatpush.msra.mxu1 %v1586_v38 }
 0x4e7   :  { %721 = vmatpush.msrb.mxu0 %v1504_v7 }
 0x4e8   :  { %907 = vmatpush.msra.mxu1 %v1593_v39 }
 0x4ea   :  { %908 = vmatpush.msra.mxu1 %v1600_v40 }
 0x4ec   :  { %909 = vmatpush.msra.mxu1 %v1607_v41 }
 0x4ee   :  { %910 = vmatpush.msra.mxu1 %v1617_v44 }
 0x55c   :  { %v453_v49 = vpop.f32.mrf.mxu1 }
 0x55d   :  { %v457_v50 = vrot.slane %v453_v49, 4  ;;  %v380_v51 = vpop.f32.mrf.mxu0 }
 0x55e   :  { %v381_v52 = vadd.f32 %v1655_v47, %v380_v51 }
 0x55f   :  { %v459_v53 = vadd.f32 %v457_v50, %v1555_v22 }
 0x560   :  { %1323 = vtanh.f32 %v381_v52  ;;  %v383_v62 = vmul.f32 0.5, %v381_v52 }
 0x561   :  { %1325 = vtanh.f32 %v459_v53  ;;  %v460_v56 = vmul.f32 0.5, %v459_v53 }
 0x563   :  { %1327 = vtanh.f32 %v460_v56 }
 0x564   :  { %1329 = vtanh.f32 %v383_v62 }
 0x566   :  { %v1324_v54 = vpop.eup %1323 }
 0x567   :  { %v1326_v55 = vpop.eup %1325  ;;  %390 = vrot.lane.b32.xlu1 %v1324_v54, %s1417_s2 }
 0x568   :  { %470 = vrot.lane.b32.xlu2 %v1326_v55, %s1417_s2 }
 0x569   :  { %v1328_v57 = vpop.eup %1327 }
 0x56a   :  { %v462_v58 = vadd.f32 1.0, %v1328_v57  ;;  %v1330_v63 = vpop.eup %1329 }
 0x56b   :  { %v385_v0 = vadd.f32 1.0, %v1330_v63 }
 0x56c   :  { %v463_v59 = vmul.f32 0.5, %v462_v58 }
 0x56d   :  { %v386_v1 = vmul.f32 0.5, %v385_v0 }
 0x56e   :  { %v468_v10 = vmul.f32 %v466_v8, %v463_v59 }
 0x56f   :  { %v388_v15 = vmul.f32 %v386_v1, %v1663_v9 }
 0x5c2   :  { %v471_v60 = vpop.permute.xlu2 %470 }
 0x5c3   :  { %v473_v61 = vmul.f32 %v471_v60, %v463_v59 }
 0x5c5   :  { %475 = vrot.lane.b32.xlu1 %v473_v61, %s1418_s4 }
 0x5d9   :  { %v391_v4 = vpop.permute.xlu1 %390 }
 0x5da   :  { %v393_v6 = vmul.f32 %v391_v4, %v386_v1 }
 0x5dc   :  { %395 = vrot.lane.b32.xlu0 %v393_v6, %s1418_s4 }
 0x637   :  { %v476_v11 = vpop.permute.xlu1 %475 }
 0x638   :  { %v1735_v12 = vadd.f32 %v476_v11, %v468_v10 }
 0x63a   :  { %1331 = vtanh.f32 %v1735_v12 }
 0x640   :  { %v1332_v13 = vpop.eup %1331 }
 0x641   :  { %481 = vrot.lane.b32.xlu0 %v1332_v13, %s1417_s2 }
 0x64e   :  { %v396_v16 = vpop.permute.xlu0 %395 }
 0x64f   :  { %v1740_v18 = vadd.f32 %v396_v16, %v388_v15 }
 0x651   :  { %1333 = vtanh.f32 %v1740_v18 }
 0x657   :  { %v1334_v20 = vpop.eup %1333 }
 0x658   :  { %401 = vrot.lane.b32.xlu2 %v1334_v20, %s1417_s2 }
 0x6b2   :  { %v402_v14 = vpop.permute.xlu2 %401 }
 0x6b3   :  { %v1744_v21 = vmul.f32 %v402_v14, %v386_v1  ;;  %v482_v23 = vpop.permute.xlu0 %481 }
 0x6b4   :  { %v484_v24 = vmul.f32 %v482_v23, %v463_v59  ;;  %v601_v59 = vrot.slane %v1735_v12, 6 }
 0x6b5   :  { %v489_v25 = vrot.slane %v1744_v21, 4 }
 0x6b6   :  { %v566_v26 = vrot.slane %v484_v24, 4  ;;  %486 = vrot.lane.b32.xlu1 %v484_v24, %s1418_s4 }
 0x6b7   :  { %490 = vrot.lane.b32.xlu2 %v489_v25, %s1417_s2 }
 0x6b8   :  { %567 = vrot.lane.b32.xlu0 %v566_v26, %s1418_s4 }
 0x711   :  { %v491_v9 = vpop.permute.xlu2 %490 }
 0x728   :  { %v487_v27 = vpop.permute.xlu1 %486 }
 0x729   :  { %v493_v28 = vsel %vm122_vm1, %v487_v27, %v491_v9 }
 0x72a   :  { %v495_v29 = vrot.slane %v493_v28, 4  ;;  %v568_v30 = vpop.permute.xlu0 %567 }
 0x72b   :  { %1279 = vmatmul.msk.f32.vlgmr.msra.gmra.mxu0 %vm122_vm1, %v568_v30 }
 0x72c   :  { %1277 = vmatmul.msk.f32.vlgmr.msrb.gmra.mxu2 %vm227_vm2, %v495_v29  ;;  %845 = vmatpush.msra.mxu0 %v1481_v2 }
 0x72d   :  { %1038 = vmatpush.msrb.mxu2 %v1567_v35 }
 0x72e   :  { %846 = vmatpush.msra.mxu0 %v1487_v3 }
 0x72f   :  { %1039 = vmatpush.msrb.mxu2 %v1572_v36 }
 0x730   :  { %847 = vmatpush.msra.mxu0 %v1495_v5 }
 0x731   :  { %1040 = vmatpush.msrb.mxu2 %v1579_v37 }
 0x732   :  { %848 = vmatpush.msra.mxu0 %v1504_v7 }
 0x733   :  { %1041 = vmatpush.msrb.mxu2 %v1586_v38 }
 0x735   :  { %1042 = vmatpush.msrb.mxu2 %v1593_v39 }
 0x737   :  { %1043 = vmatpush.msrb.mxu2 %v1600_v40 }
 0x739   :  { %1044 = vmatpush.msrb.mxu2 %v1607_v41 }
 0x73b   :  { %1045 = vmatpush.msrb.mxu2 %v1617_v44 }
 0x7a8   :  { %v588_v31 = vpop.f32.mrf.mxu0 }
 0x7a9   :  { %v592_v32 = vrot.slane %v588_v31, 2 }
 0x7ab   :  { %v594_v33 = vadd.f32 %v592_v32, %v1555_v22 }
 0x7ad   :  { %1335 = vtanh.f32 %v594_v33  ;;  %v595_v46 = vmul.f32 0.5, %v594_v33 }
 0x7af   :  { %v515_v34 = vpop.f32.mrf.mxu2 }
 0x7b0   :  { %v516_v42 = vadd.f32 %v1655_v47, %v515_v34 }
 0x7b2   :  { %1337 = vtanh.f32 %v516_v42  ;;  %v518_v22 = vmul.f32 0.5, %v516_v42 }
 0x7b3   :  { %v1336_v43 = vpop.eup %1335  ;;  %1339 = vtanh.f32 %v595_v46 }
 0x7b4   :  { %605 = vrot.lane.b32.xlu2 %v1336_v43, %s1417_s2  ;;  %1341 = vtanh.f32 %v518_v22 }
 0x7b8   :  { %v1338_v45 = vpop.eup %1337 }
 0x7b9   :  { %525 = vrot.lane.b32.xlu1 %v1338_v45, %s1417_s2  ;;  %v1340_v49 = vpop.eup %1339 }
 0x7ba   :  { %v597_v50 = vadd.f32 1.0, %v1340_v49  ;;  %v1342_v54 = vpop.eup %1341 }
 0x7bb   :  { %v520_v55 = vadd.f32 1.0, %v1342_v54 }
 0x7bc   :  { %v598_v51 = vmul.f32 0.5, %v597_v50 }
 0x7bd   :  { %v521_v56 = vmul.f32 0.5, %v520_v55 }
 0x7be   :  { %v603_v60 = vmul.f32 %v601_v59, %v598_v51 }
 0x7bf   :  { %v523_v0 = vmul.f32 %v521_v56, %v1740_v18 }
 0x80e   :  { %v606_v52 = vpop.permute.xlu2 %605 }
 0x80f   :  { %v608_v53 = vmul.f32 %v606_v52, %v598_v51 }
 0x811   :  { %610 = vrot.lane.b32.xlu1 %v608_v53, %s1418_s4 }
 0x82b   :  { %v526_v57 = vpop.permute.xlu1 %525 }
 0x82c   :  { %v528_v58 = vmul.f32 %v526_v57, %v521_v56 }
 0x82e   :  { %530 = vrot.lane.b32.xlu0 %v528_v58, %s1418_s4 }
 0x883   :  { %v611_v61 = vpop.permute.xlu1 %610 }
 0x884   :  { %v1772_v62 = vadd.f32 %v611_v61, %v603_v60 }
 0x886   :  { %1343 = vtanh.f32 %v1772_v62  ;;  %v733_v32 = vrot.slane %v1772_v62, 6 }
 0x88c   :  { %v1344_v63 = vpop.eup %1343 }
 0x88d   :  { %616 = vrot.lane.b32.xlu0 %v1344_v63, %s1417_s2 }
 0x8a0   :  { %v531_v1 = vpop.permute.xlu0 %530 }
 0x8a1   :  { %v1777_v4 = vadd.f32 %v531_v1, %v523_v0 }
 0x8a3   :  { %1345 = vtanh.f32 %v1777_v4 }
 0x8a9   :  { %v1346_v6 = vpop.eup %1345 }
 0x8aa   :  { %536 = vrot.lane.b32.xlu2 %v1346_v6, %s1417_s2 }
 0x8ff   :  { %v617_v8 = vpop.permute.xlu0 %616 }
 0x900   :  { %v619_v10 = vmul.f32 %v617_v8, %v598_v51 }
 0x902   :  { %v701_v11 = vrot.slane %v619_v10, 6  ;;  %621 = vrot.lane.b32.xlu1 %v619_v10, %s1418_s4 }
 0x904   :  { %702 = vrot.lane.b32.xlu0 %v701_v11, %s1418_s4  ;;  %v537_v12 = vpop.permute.xlu2 %536 }
 0x905   :  { %v1783_v13 = vmul.f32 %v537_v12, %v521_v56 }
 0x907   :  { %v624_v15 = vrot.slane %v1783_v13, 2 }
 0x909   :  { %625 = vrot.lane.b32.xlu2 %v624_v15, %s1417_s2 }
 0x963   :  { %v626_v16 = vpop.permute.xlu2 %625 }
 0x974   :  { %v622_v18 = vpop.permute.xlu1 %621 }
 0x975   :  { %v628_v20 = vsel %vm122_vm1, %v622_v18, %v626_v16 }
 0x976   :  { %v630_v14 = vrot.slane %v628_v20, 6  ;;  %v703_v23 = vpop.permute.xlu0 %702 }
 0x977   :  { %1282 = vmatmul.msk.f32.vlgmr.msrb.gmra.mxu0 %vm122_vm1, %v703_v23 }
 0x978   :  { %1280 = vmatmul.msk.f32.vlgmr.msrb.gmra.mxu1 %vm227_vm2, %v630_v14  ;;  %980 = vmatpush.msrb.mxu0 %v1481_v2 }
 0x979   :  { %1173 = vmatpush.msrb.mxu1 %v1567_v35  ;;  %v1804_v35 = vadd.f32 %v1552_v19, %v1726_v48 }
 0x97a   :  { %981 = vmatpush.msrb.mxu0 %v1487_v3 }
 0x97b   :  { %1174 = vmatpush.msrb.mxu1 %v1572_v36 }
 0x97c   :  { %982 = vmatpush.msrb.mxu0 %v1495_v5 }
 0x97d   :  { %1175 = vmatpush.msrb.mxu1 %v1579_v37 }
 0x97e   :  { %983 = vmatpush.msrb.mxu0 %v1504_v7 }
 0x97f   :  { %1176 = vmatpush.msrb.mxu1 %v1586_v38 }
 0x981   :  { %1177 = vmatpush.msrb.mxu1 %v1593_v39 }
 0x983   :  { %1178 = vmatpush.msrb.mxu1 %v1600_v40 }
 0x985   :  { %1179 = vmatpush.msrb.mxu1 %v1607_v41 }
 0x987   :  { %1180 = vmatpush.msrb.mxu1 %v1617_v44 }
 0x9f4   :  { %v723_v36 = vpop.f32.mrf.mxu0 }
 0x9f5   :  { %v726_v24 = vadd.f32 %v723_v36, %v1804_v35  ;;  %v650_v37 = vpop.f32.mrf.mxu1 }
 0x9f6   :  { %v651_v25 = vadd.f32 %v1655_v47, %v650_v37 }
 0x9f7   :  { %1347 = vtanh.f32 %v726_v24  ;;  %v727_v40 = vmul.f32 0.5, %v726_v24 }
 0x9f8   :  { %1349 = vtanh.f32 %v651_v25  ;;  %v653_v9 = vmul.f32 0.5, %v651_v25 }
 0x9f9   :  { %1351 = vtanh.f32 %v727_v40 }
 0x9fa   :  { %1353 = vtanh.f32 %v653_v9 }
 0x9fd   :  { %v1348_v38 = vpop.eup %1347 }
 0x9fe   :  { %v1350_v39 = vpop.eup %1349  ;;  %737 = vrot.lane.b32.xlu2 %v1348_v38, %s1417_s2 }
 0x9ff   :  { %660 = vrot.lane.b32.xlu1 %v1350_v39, %s1417_s2  ;;  %v1352_v41 = vpop.eup %1351 }
 0xa00   :  { %v729_v44 = vadd.f32 1.0, %v1352_v41  ;;  %v1354_v27 = vpop.eup %1353 }
 0xa01   :  { %v655_v28 = vadd.f32 1.0, %v1354_v27 }
 0xa02   :  { %v730_v19 = vmul.f32 0.5, %v729_v44 }
 0xa03   :  { %v656_v29 = vmul.f32 0.5, %v655_v28 }
 0xa04   :  { %v735_v33 = vmul.f32 %v733_v32, %v730_v19 }
 0xa05   :  { %v658_v45 = vmul.f32 %v656_v29, %v1777_v4 }
 0xa58   :  { %v738_v48 = vpop.permute.xlu2 %737 }
 0xa59   :  { %v740_v26 = vmul.f32 %v738_v48, %v730_v19 }
 0xa5b   :  { %742 = vrot.lane.b32.xlu1 %v740_v26, %s1418_s4 }
 0xa71   :  { %v661_v30 = vpop.permute.xlu1 %660 }
 0xa72   :  { %v663_v31 = vmul.f32 %v661_v30, %v656_v29 }
 0xa74   :  { %665 = vrot.lane.b32.xlu0 %v663_v31, %s1418_s4 }
 0xacd   :  { %v743_v34 = vpop.permute.xlu1 %742 }
 0xace   :  { %v745_v42 = vadd.f32 %v743_v34, %v735_v33 }
 0xad0   :  { %1355 = vtanh.f32 %v745_v42  ;;  %v863_v14 = vrot.slane %v745_v42, 6 }
 0xad6   :  { %v1356_v43 = vpop.eup %1355 }
 0xad7   :  { %748 = vrot.lane.b32.xlu0 %v1356_v43, %s1417_s2 }
 0xae6   :  { %v666_v46 = vpop.permute.xlu0 %665 }
 0xae7   :  { %v668_v49 = vadd.f32 %v666_v46, %v658_v45 }
 0xae9   :  { %1357 = vtanh.f32 %v668_v49 }
 0xaef   :  { %v1358_v50 = vpop.eup %1357 }
 0xaf0   :  { %671 = vrot.lane.b32.xlu2 %v1358_v50, %s1417_s2 }
 0xb49   :  { %v749_v51 = vpop.permute.xlu0 %748 }
 0xb4a   :  { %v751_v52 = vmul.f32 %v749_v51, %v730_v19  ;;  %v672_v53 = vpop.permute.xlu2 %671 }
 0xb4b   :  { %v1816_v22 = vmul.f32 %v672_v53, %v656_v29 }
 0xb4c   :  { %753 = vrot.lane.b32.xlu1 %v751_v52, %s1418_s4 }
 0xb4d   :  { %756 = vrot.lane.b32.xlu2 %v1816_v22, %s1417_s2 }
 0xba7   :  { %v757_v54 = vpop.permute.xlu2 %756 }
 0xbbe   :  { %v754_v55 = vpop.permute.xlu1 %753 }
 0xbbf   :  { %v759_v56 = vsel %vm122_vm1, %v754_v55, %v757_v54  ;;  %1285 = vmatmul.msk.f32.vlgmr.msra.gmra.mxu0 %vm122_vm1, %v754_v55 }
 0xbc0   :  { %1283 = vmatmul.msk.f32.vlgmr.msra.gmra.mxu2 %vm227_vm2, %v759_v56  ;;  %1115 = vmatpush.msra.mxu0 %v1481_v2 }
 0xbc2   :  { %1116 = vmatpush.msra.mxu0 %v1487_v3 }
 0xbc4   :  { %1117 = vmatpush.msra.mxu0 %v1495_v5 }
 0xbc6   :  { %1118 = vmatpush.msra.mxu0 %v1504_v7 }
 0xc3c   :  { %v850_v57 = vpop.f32.mrf.mxu0 }
 0xc3d   :  { %v854_v58 = vrot.slane %v850_v57, 6 }
 0xc3f   :  { %v856_v59 = vadd.f32 %v854_v58, %v1804_v35 }
 0xc41   :  { %1359 = vtanh.f32 %v856_v59  ;;  %v857_v2 = vmul.f32 0.5, %v856_v59 }
 0xc43   :  { %v780_v60 = vpop.f32.mrf.mxu2 }
 0xc44   :  { %v781_v61 = vadd.f32 %v1655_v47, %v780_v60 }
 0xc46   :  { %1361 = vtanh.f32 %v781_v61  ;;  %v783_v3 = vmul.f32 0.5, %v781_v61 }
 0xc47   :  { %v1360_v62 = vpop.eup %1359  ;;  %1363 = vtanh.f32 %v857_v2 }
 0xc48   :  { %867 = vrot.lane.b32.xlu1 %v1360_v62, %s1417_s2  ;;  %1365 = vtanh.f32 %v783_v3 }
 0xc4c   :  { %v1362_v63 = vpop.eup %1361 }
 0xc4d   :  { %790 = vrot.lane.b32.xlu0 %v1362_v63, %s1417_s2  ;;  %v1364_v5 = vpop.eup %1363 }
 0xc4e   :  { %v859_v7 = vadd.f32 1.0, %v1364_v5  ;;  %v1366_v0 = vpop.eup %1365 }
 0xc4f   :  { %v785_v4 = vadd.f32 1.0, %v1366_v0 }
 0xc50   :  { %v860_v1 = vmul.f32 0.5, %v859_v7 }
 0xc51   :  { %v786_v10 = vmul.f32 0.5, %v785_v4 }
 0xc52   :  { %v865_v23 = vmul.f32 %v863_v14, %v860_v1 }
 0xc53   :  { %v788_v15 = vmul.f32 %v786_v10, %v668_v49 }
 0xcba   :  { %v868_v6 = vpop.permute.xlu1 %867 }
 0xcbb   :  { %v870_v8 = vmul.f32 %v868_v6, %v860_v1 }
 0xcbd   :  { %872 = vrot.lane.b32.xlu0 %v870_v8, %s1418_s4 }
 0xcbf   :  { %v791_v11 = vpop.permute.xlu0 %790 }
 0xcc0   :  { %v793_v12 = vmul.f32 %v791_v11, %v786_v10 }
 0xcc2   :  { %795 = vrot.lane.b32.xlu2 %v793_v12, %s1418_s4 }
 0xd1c   :  { %v796_v16 = vpop.permute.xlu2 %795 }
 0xd1d   :  { %v798_v18 = vadd.f32 %v796_v16, %v788_v15 }
 0xd1f   :  { %1367 = vtanh.f32 %v798_v18 }
 0xd25   :  { %v1368_v20 = vpop.eup %1367 }
 0xd26   :  { %801 = vrot.lane.b32.xlu1 %v1368_v20, %s1417_s2 }
 0xd2f   :  { %v873_v36 = vpop.permute.xlu0 %872 }
 0xd30   :  { %v875_v24 = vadd.f32 %v873_v36, %v865_v23 }
 0xd32   :  { %1369 = vtanh.f32 %v875_v24  ;;  %v998_v57 = vrot.slane %v875_v24, 6 }
 0xd38   :  { %v1370_v37 = vpop.eup %1369 }
 0xd39   :  { %878 = vrot.lane.b32.xlu2 %v1370_v37, %s1417_s2 }
 0xd93   :  { %v879_v25 = vpop.permute.xlu2 %878 }
 0xd94   :  { %v881_v38 = vmul.f32 %v879_v25, %v860_v1 }
 0xd96   :  { %v963_v39 = vrot.slane %v881_v38, 2  ;;  %883 = vrot.lane.b32.xlu0 %v881_v38, %s1418_s4 }
 0xd98   :  { %964 = vrot.lane.b32.xlu2 %v963_v39, %s1418_s4  ;;  %v802_v40 = vpop.permute.xlu1 %801 }
 0xd99   :  { %v1838_v41 = vmul.f32 %v802_v40, %v786_v10 }
 0xd9b   :  { %v886_v44 = vrot.slane %v1838_v41, 6 }
 0xd9d   :  { %887 = vrot.lane.b32.xlu1 %v886_v44, %s1417_s2 }
 0xdf2   :  { %v965_v19 = vpop.permute.xlu2 %964 }
 0xdf3   :  { %1288 = vmatmul.msk.f32.vlgmr.msrb.gmra.mxu0 %vm122_vm1, %v965_v19 }
 0xe08   :  { %v884_v48 = vpop.permute.xlu0 %883 }
 0xe0f   :  { %v888_v26 = vpop.permute.xlu1 %887 }
 0xe10   :  { %v890_v9 = vsel %vm122_vm1, %v884_v48, %v888_v26 }
 0xe11   :  { %v892_v27 = vrot.slane %v890_v9, 2 }
 0xe13   :  { %1286 = vmatmul.msk.f32.vlgmr.msra.gmra.mxu1 %vm227_vm2, %v892_v27 }
 0xe70   :  { %v985_v28 = vpop.f32.mrf.mxu0 }
 0xe71   :  { %v989_v29 = vrot.slane %v985_v28, 4 }
 0xe73   :  { %v991_v30 = vadd.f32 %v989_v29, %v1804_v35 }
 0xe75   :  { %1371 = vtanh.f32 %v991_v30  ;;  %v992_v42 = vmul.f32 0.5, %v991_v30 }
 0xe7b   :  { %v1372_v31 = vpop.eup %1371 }
 0xe7c   :  { %1002 = vrot.lane.b32.xlu1 %v1372_v31, %s1417_s2 }
 0xe90   :  { %v912_v32 = vpop.f32.mrf.mxu1 }
 0xe91   :  { %v913_v33 = vadd.f32 %v1655_v47, %v912_v32 }
 0xe93   :  { %1373 = vtanh.f32 %v913_v33  ;;  %v915_v51 = vmul.f32 0.5, %v913_v33 }
 0xe94   :  { %1375 = vtanh.f32 %v992_v42 }
 0xe95   :  { %1377 = vtanh.f32 %v915_v51 }
 0xe99   :  { %v1374_v34 = vpop.eup %1373 }
 0xe9a   :  { %922 = vrot.lane.b32.xlu0 %v1374_v34, %s1417_s2  ;;  %v1376_v43 = vpop.eup %1375 }
 0xe9b   :  { %v994_v45 = vadd.f32 1.0, %v1376_v43  ;;  %v1378_v52 = vpop.eup %1377 }
 0xe9c   :  { %v917_v53 = vadd.f32 1.0, %v1378_v52  ;;  %v1880_v52 = vld [vmem:[%s1996_s7 + $0x18] sm:$0xff] }
 0xe9d   :  { %v995_v46 = vmul.f32 0.5, %v994_v45  ;;  %290 = vmatpush.msra.mxu3 %v1880_v52 }
 0xe9e   :  { %v918_v54 = vmul.f32 0.5, %v917_v53  ;;  %v1886_v53 = vld [vmem:[%s1996_s7 + $0x10] sm:$0xff] }
 0xe9f   :  { %v1000_v58 = vmul.f32 %v998_v57, %v995_v46  ;;  %291 = vmatpush.msra.mxu3 %v1886_v53 }
 0xea0   :  { %v920_v61 = vmul.f32 %v918_v54, %v798_v18 }
 0xeee   :  { %v1003_v49 = vpop.permute.xlu1 %1002 }
 0xeef   :  { %v1005_v50 = vmul.f32 %v1003_v49, %v995_v46 }
 0xef1   :  { %1007 = vrot.lane.b32.xlu0 %v1005_v50, %s1418_s4 }
 0xf0c   :  { %v923_v55 = vpop.permute.xlu0 %922 }
 0xf0d   :  { %v925_v56 = vmul.f32 %v923_v55, %v918_v54 }
 0xf0f   :  { %927 = vrot.lane.b32.xlu2 %v925_v56, %s1418_s4 }
 0xf63   :  { %v1008_v59 = vpop.permute.xlu0 %1007 }
 0xf64   :  { %v1010_v60 = vadd.f32 %v1008_v59, %v1000_v58 }
 0xf66   :  { %1379 = vtanh.f32 %v1010_v60  ;;  %v1133_v28 = vrot.slane %v1010_v60, 6 }
 0xf69   :  { %v928_v62 = vpop.permute.xlu2 %927 }
 0xf6a   :  { %v930_v63 = vadd.f32 %v928_v62, %v920_v61  ;;  %v1916_v61 = vld [vmem:[%s1997_s8] ss:$0 sm:$0xff] }
 0xf6c   :  { %v1380_v2 = vpop.eup %1379  ;;  %1381 = vtanh.f32 %v930_v63 }
 0xf6d   :  { %1013 = vrot.lane.b32.xlu2 %v1380_v2, %s1417_s2 }
 0xf72   :  { %v1382_v3 = vpop.eup %1381 }
 0xf73   :  { %933 = vrot.lane.b32.xlu1 %v1382_v3, %s1417_s2 }
 0xfc7   :  { %v1014_v5 = vpop.permute.xlu2 %1013 }
 0xfc8   :  { %v1016_v7 = vmul.f32 %v1014_v5, %v995_v46 }
 0xfca   :  { %v1098_v0 = vrot.slane %v1016_v7, 4  ;;  %1018 = vrot.lane.b32.xlu0 %v1016_v7, %s1418_s4 }
 0xfcc   :  { %1099 = vrot.lane.b32.xlu2 %v1098_v0, %s1418_s4 }
 0xfe5   :  { %v934_v1 = vpop.permute.xlu1 %933 }
 0xfe6   :  { %v936_v4 = vmul.f32 %v934_v1, %v918_v54 }
 0xfe8   :  { %v1021_v6 = vrot.slane %v936_v4, 4 }
 0xfea   :  { %1022 = vrot.lane.b32.xlu1 %v1021_v6, %s1417_s2 }
0x1026   :  { %v1100_v8 = vpop.permute.xlu2 %1099 }
0x1027   :  { %1291 = vmatmul.msk.f32.vlgmr.msra.gmra.mxu0 %vm122_vm1, %v1100_v8 }
0x103c   :  { %v1019_v10 = vpop.permute.xlu0 %1018 }
0x105c   :  { %v1023_v11 = vpop.permute.xlu1 %1022 }
0x105d   :  { %v1025_v12 = vsel %vm122_vm1, %v1019_v10, %v1023_v11 }
0x105e   :  { %v1027_v15 = vrot.slane %v1025_v12, 4 }
0x1060   :  { %1289 = vmatmul.msk.f32.vlgmr.msrb.gmra.mxu2 %vm227_vm2, %v1027_v15 }
0x10a4   :  { %v1120_v16 = vpop.f32.mrf.mxu0 }
0x10a5   :  { %v1124_v18 = vrot.slane %v1120_v16, 2 }
0x10a7   :  { %v1126_v20 = vadd.f32 %v1124_v18, %v1804_v35 }
0x10a9   :  { %1383 = vtanh.f32 %v1126_v20  ;;  %v1127_v37 = vmul.f32 0.5, %v1126_v20 }
0x10af   :  { %v1384_v14 = vpop.eup %1383 }
0x10b0   :  { %1137 = vrot.lane.b32.xlu1 %v1384_v14, %s1417_s2 }
0x10e3   :  { %v1047_v23 = vpop.f32.mrf.mxu2 }
0x10e4   :  { %v1048_v36 = vadd.f32 %v1655_v47, %v1047_v23 }
0x10e6   :  { %1385 = vtanh.f32 %v1048_v36  ;;  %v1050_v35 = vmul.f32 0.5, %v1048_v36 }
0x10e7   :  { %1387 = vtanh.f32 %v1127_v37 }
0x10e8   :  { %1389 = vtanh.f32 %v1050_v35 }
0x10ec   :  { %v1386_v24 = vpop.eup %1385 }
0x10ed   :  { %1057 = vrot.lane.b32.xlu0 %v1386_v24, %s1417_s2  ;;  %v1388_v25 = vpop.eup %1387 }
0x10ee   :  { %v1129_v38 = vadd.f32 1.0, %v1388_v25  ;;  %v1390_v19 = vpop.eup %1389 }
0x10ef   :  { %v1052_v48 = vadd.f32 1.0, %v1390_v19 }
0x10f0   :  { %v1130_v39 = vmul.f32 0.5, %v1129_v38 }
0x10f1   :  { %v1053_v26 = vmul.f32 0.5, %v1052_v48 }
0x10f2   :  { %v1135_v29 = vmul.f32 %v1133_v28, %v1130_v39 }
0x10f3   :  { %v1055_v33 = vmul.f32 %v1053_v26, %v930_v63 }
0x1122   :  { %v1138_v40 = vpop.permute.xlu1 %1137 }
0x1123   :  { %v1140_v44 = vmul.f32 %v1138_v40, %v1130_v39 }
0x1125   :  { %1142 = vrot.lane.b32.xlu0 %v1140_v44, %s1418_s4 }
0x115f   :  { %v1058_v9 = vpop.permute.xlu0 %1057 }
0x1160   :  { %v1060_v27 = vmul.f32 %v1058_v9, %v1053_v26 }
0x1162   :  { %1062 = vrot.lane.b32.xlu2 %v1060_v27, %s1418_s4 }
0x1197   :  { %v1143_v30 = vpop.permute.xlu0 %1142 }
0x1198   :  { %v1145_v31 = vadd.f32 %v1143_v30, %v1135_v29 }
0x119a   :  { %1391 = vtanh.f32 %v1145_v31 }
0x11a0   :  { %v1392_v32 = vpop.eup %1391 }
0x11a1   :  { %1148 = vrot.lane.b32.xlu2 %v1392_v32, %s1417_s2 }
0x11bc   :  { %v1063_v34 = vpop.permute.xlu2 %1062 }
0x11bd   :  { %v1866_v42 = vadd.f32 %v1063_v34, %v1055_v33 }
0x11bf   :  { %1393 = vtanh.f32 %v1866_v42 }
0x11c5   :  { %v1394_v43 = vpop.eup %1393 }
0x11c6   :  { %1068 = vrot.lane.b32.xlu1 %v1394_v43, %s1417_s2 }
0x11fb   :  { %v1149_v45 = vpop.permute.xlu2 %1148 }
0x11fc   :  { %v1151_v46 = vmul.f32 %v1149_v45, %v1130_v39 }
0x11fe   :  { %1153 = vrot.lane.b32.xlu0 %v1151_v46, %s1418_s4 }
0x1238   :  { %v1069_v49 = vpop.permute.xlu1 %1068 }
0x1239   :  { %v1071_v50 = vmul.f32 %v1069_v49, %v1053_v26 }
0x123b   :  { %v1156_v51 = vrot.slane %v1071_v50, 2 }
0x123d   :  { %1157 = vrot.lane.b32.xlu1 %v1156_v51, %s1417_s2 }
0x1245   :  { %274 = vrot.lane.b32.xlu1 %v1672_v17, %s1418_s4  ;;  %v1892_v17 = vld [vmem:[%s1996_s7 + $0x8] sm:$0xff] }
0x1246   :  { %292 = vmatpush.msra.mxu3 %v1892_v17 }
0x124d   :  { %541 = vrot.lane.b32.xlu1 %v1783_v13, %s1418_s4  ;;  %v1897_v13 = vld [vmem:[%s1996_s7] sm:$0xff] }
0x124e   :  { %293 = vmatpush.msra.mxu3 %v1897_v13 }
0x1250   :  { %422 = vmatpush.msrb.mxu3 %v1880_v52 }
0x1252   :  { %423 = vmatpush.msrb.mxu3 %v1886_v53 }
0x1254   :  { %424 = vmatpush.msrb.mxu3 %v1892_v17 }
0x1255   :  { %938 = vrot.lane.b32.xlu1 %v936_v4, %s1418_s4 }
0x1256   :  { %425 = vmatpush.msrb.mxu3 %v1897_v13 }
0x1270   :  { %v1154_v54 = vpop.permute.xlu0 %1153 }
0x12af   :  { %v1158_v55 = vpop.permute.xlu1 %1157 }
0x12b0   :  { %v1160_v56 = vsel %vm122_vm1, %v1154_v54, %v1158_v55 }
0x12b1   :  { %v1162_v57 = vrot.slane %v1160_v56, 6 }
0x12b3   :  { %1292 = vmatmul.msk.f32.vlgmr.msrb.gmra.mxu1 %vm227_vm2, %v1162_v57 }
0x12b7   :  { %v275_v58 = vpop.permute.xlu1 %274 }
0x12b8   :  { %1272 = vmatmul.msk.f32.vlgmr.msra.gmra.mxu3 %vm122_vm1, %v275_v58 }
0x12b9   :  { %557 = vmatpush.msra.mxu3 %v1880_v52 }
0x12bb   :  { %558 = vmatpush.msra.mxu3 %v1886_v53 }
0x12bd   :  { %559 = vmatpush.msra.mxu3 %v1892_v17 }
0x12bf   :  { %560 = vmatpush.msra.mxu3 %v1897_v13 }
0x1330   :  { %v1182_v59 = vpop.f32.mrf.mxu1 }
0x1331   :  { %v1183_v60 = vadd.f32 %v1655_v47, %v1182_v59 }
0x1333   :  { %1395 = vtanh.f32 %v1183_v60  ;;  %v1185_v47 = vmul.f32 0.5, %v1183_v60 }
0x1335   :  { %1397 = vtanh.f32 %v1185_v47 }
0x1339   :  { %v1396_v62 = vpop.eup %1395 }
0x133a   :  { %1192 = vrot.lane.b32.xlu2 %v1396_v62, %s1417_s2 }
0x133b   :  { %v295_v63 = vpop.f32.mrf.mxu3  ;;  %v1398_v3 = vpop.eup %1397 }
0x133c   :  { %v296_v2 = vadd.f32 %v1916_v61, %v295_v63  ;;  %v1187_v5 = vadd.f32 1.0, %v1398_v3 }
0x133e   :  { %298 = vst [vmem:[%s1998_s9] sm:$0x3] %v296_v2  ;;  %v1188_v7 = vmul.f32 0.5, %v1187_v5 }
0x1340   :  { %v1190_v6 = vmul.f32 %v1188_v7, %v1866_v42 }
0x1342   :  { %406 = vrot.lane.b32.xlu2 %v1744_v21, %s1418_s4  ;;  %v542_v21 = vpop.permute.xlu1 %541 }
0x134a   :  { %676 = vrot.lane.b32.xlu2 %v1816_v22, %s1418_s4  ;;  %v939_v24 = vpop.permute.xlu1 %938 }
0x1352   :  { %1073 = vrot.lane.b32.xlu2 %v1071_v50, %s1418_s4 }
0x1394   :  { %v1193_v0 = vpop.permute.xlu2 %1192 }
0x1395   :  { %v1195_v1 = vmul.f32 %v1193_v0, %v1188_v7 }
0x1397   :  { %1197 = vrot.lane.b32.xlu0 %v1195_v1, %s1418_s4 }
0x139c   :  { %v407_v4 = vpop.permute.xlu2 %406 }
0x139d   :  { %1275 = vmatmul.msk.f32.vlgmr.msrb.gmra.mxu3 %vm122_vm1, %v407_v4 }
0x139e   :  { %692 = vmatpush.msrb.mxu3 %v1880_v52 }
0x13a0   :  { %693 = vmatpush.msrb.mxu3 %v1886_v53 }
0x13a2   :  { %694 = vmatpush.msrb.mxu3 %v1892_v17 }
0x13a4   :  { %695 = vmatpush.msrb.mxu3 %v1897_v13  ;;  %v677_v22 = vpop.permute.xlu2 %676 }
0x13a5   :  { %1278 = vmatmul.msk.f32.vlgmr.msra.gmra.mxu3 %vm122_vm1, %v542_v21 }
0x13a6   :  { %822 = vmatpush.msra.mxu3 %v1880_v52 }
0x13a8   :  { %823 = vmatpush.msra.mxu3 %v1886_v53 }
0x13aa   :  { %824 = vmatpush.msra.mxu3 %v1892_v17 }
0x13ac   :  { %825 = vmatpush.msra.mxu3 %v1897_v13  ;;  %v1074_v37 = vpop.permute.xlu2 %1073 }
0x13ad   :  { %1281 = vmatmul.msk.f32.vlgmr.msrb.gmra.mxu3 %vm122_vm1, %v677_v22 }
0x13ae   :  { %954 = vmatpush.msrb.mxu3 %v1880_v52 }
0x13b0   :  { %955 = vmatpush.msrb.mxu3 %v1886_v53 }
0x13b2   :  { %956 = vmatpush.msrb.mxu3 %v1892_v17 }
0x13b4   :  { %957 = vmatpush.msrb.mxu3 %v1897_v13 }
0x1409   :  { %v1198_v8 = vpop.permute.xlu0 %1197 }
0x140a   :  { %v1200_v10 = vadd.f32 %v1198_v8, %v1190_v6 }
0x140c   :  { %1399 = vtanh.f32 %v1200_v10 }
0x1412   :  { %v1400_v11 = vpop.eup %1399 }
0x1413   :  { %1203 = vrot.lane.b32.xlu0 %v1400_v11, %s1417_s2 }
0x141b   :  { %806 = vrot.lane.b32.xlu0 %v1838_v41, %s1418_s4 }
0x1420   :  { %v427_v12 = vpop.f32.mrf.mxu3 }
0x1421   :  { %v428_v15 = vadd.f32 %v1916_v61, %v427_v12 }
0x1423   :  { %430 = vst [vmem:[%s1998_s9 + $0x2] sm:$0x3] %v428_v15 }
0x1428   :  { %v562_v16 = vpop.f32.mrf.mxu3 }
0x1429   :  { %v563_v18 = vadd.f32 %v1916_v61, %v562_v16 }
0x142b   :  { %565 = vst [vmem:[%s1998_s9 + $0x4] sm:$0x3] %v563_v18 }
0x1430   :  { %v697_v20 = vpop.f32.mrf.mxu3 }
0x1431   :  { %v698_v14 = vadd.f32 %v1916_v61, %v697_v20 }
0x1433   :  { %700 = vst [vmem:[%s1998_s9 + $0x6] sm:$0x3] %v698_v14 }
0x1485   :  { %v1204_v41 = vpop.permute.xlu0 %1203 }
0x1486   :  { %v1206_v23 = vmul.f32 %v1204_v41, %v1188_v7 }
0x1488   :  { %1208 = vrot.lane.b32.xlu0 %v1206_v23, %s1418_s4 }
0x148d   :  { %v807_v36 = vpop.permute.xlu0 %806 }
0x148e   :  { %1284 = vmatmul.msk.f32.vlgmr.msra.gmra.mxu3 %vm122_vm1, %v807_v36 }
0x148f   :  { %1089 = vmatpush.msra.mxu3 %v1880_v52 }
0x1491   :  { %1090 = vmatpush.msra.mxu3 %v1886_v53 }
0x1493   :  { %1091 = vmatpush.msra.mxu3 %v1892_v17 }
0x1495   :  { %1092 = vmatpush.msra.mxu3 %v1897_v13 }
0x1496   :  { %1287 = vmatmul.msk.f32.vlgmr.msrb.gmra.mxu3 %vm122_vm1, %v939_v24 }
0x1497   :  { %1224 = vmatpush.msrb.mxu3 %v1880_v52 }
0x1499   :  { %1225 = vmatpush.msrb.mxu3 %v1886_v53 }
0x149b   :  { %1226 = vmatpush.msrb.mxu3 %v1892_v17 }
0x149d   :  { %1227 = vmatpush.msrb.mxu3 %v1897_v13 }
0x149e   :  { %1290 = vmatmul.msk.f32.vlgmr.msra.gmra.mxu3 %vm122_vm1, %v1074_v37 }
0x14fa   :  { %v1209_v25 = vpop.permute.xlu0 %1208 }
0x14fb   :  { %1293 = vmatmul.msk.f32.vlgmr.msrb.gmra.mxu3 %vm122_vm1, %v1209_v25 }
0x1511   :  { %v827_v38 = vpop.f32.mrf.mxu3 }
0x1512   :  { %v828_v39 = vadd.f32 %v1916_v61, %v827_v38 }
0x1514   :  { %830 = vst [vmem:[%s1998_s9 + $0x8] sm:$0x3] %v828_v39 }
0x1519   :  { %v959_v40 = vpop.f32.mrf.mxu3 }
0x151a   :  { %v960_v44 = vadd.f32 %v1916_v61, %v959_v40 }
0x151c   :  { %962 = vst [vmem:[%s1998_s9 + $0xa] sm:$0x3] %v960_v44 }
0x1521   :  { %v1094_v35 = vpop.f32.mrf.mxu3 }
0x1522   :  { %v1095_v19 = vadd.f32 %v1916_v61, %v1094_v35 }
0x1524   :  { %1097 = vst [vmem:[%s1998_s9 + $0xc] sm:$0x3] %v1095_v19 }
0x157e   :  { %v1229_v48 = vpop.f32.mrf.mxu3 }
0x157f   :  { %v1230_v26 = vadd.f32 %v1916_v61, %v1229_v48 }
0x1581   :  { %1232 = vst [vmem:[%s1998_s9 + $0xe] sm:$0x3] %v1230_v26 }
0x1582   :  { %1237 = vsyncpa [#allocation4], 1 }

</bundles_post_ra>
